<compile_context>
chip_gen: v7x
topology: tpu7x:2x2x1
jax: 0.10.0
libtpu: 0.0.40
codegen_flags: <defaults>
</compile_context>

<pallas_src>
import functools

import jax
import jax.numpy as jnp
import numpy as np
from jax.experimental import pallas as pl
from jax.experimental.pallas import tpu as pltpu

_LANE = 128


def _round_up(x, m):
    return (x + m - 1) // m * m


def _pick_row_tile(OH, OW, target_rows=128):
    """Largest divisor TH of OH with TH*OW rows <= target and sublane-aligned."""
    candidates = [th for th in range(1, OH + 1)
                  if OH % th == 0 and ((th * OW) % 8 == 0 or th == OH)]
    fitting = [th for th in candidates if th * OW <= target_rows]
    return max(fitting) if fitting else OH


def _conv_bn_relu_kernel(x_ref, w_ref, scale_ref, shift_ref, o_ref,
                         *, KH, KW, TH, OW, stride, is_relu):
    """One grid step = one (batch, row-tile).

    x_ref:     (Hp, Wp, Cin_pad)          padded NHWC input slab (VMEM)
    w_ref:     (KH*KW*Cin_pad, Cout_pad)  im2col-ordered weights
    scale_ref: (1, Cout_pad)              gamma / sqrt(var + eps)
    shift_ref: (1, Cout_pad)              beta  - mean * scale
    o_ref:     (TH*OW, Cout_pad)          lane-dense flattened output tile
    """
    cin = x_ref.shape[-1]

    t = pl.program_id(1)
    halo_h = (TH - 1) * stride + KH
    row0 = pl.multiple_of(t * (TH * stride), TH * stride)

    # Load the halo rows for this output row-tile once.
    xs = x_ref[pl.ds(row0, halo_h), :, :]                 # (halo_h, Wp, Cin_pad)

    # Build the im2col patch once: (TH*OW, KH*KW*Cin_pad). Channel dim is
    # already 128-lane dense, so the per-window reshape stays tile-aligned.
    cols = []
    for kh in range(KH):
        for kw in range(KW):
            p = xs[kh:kh + (TH - 1) * stride + 1:stride,
                   kw:kw + (OW - 1) * stride + 1:stride, :]   # (TH, OW, Cin_pad)
            cols.append(p.reshape(TH * OW, cin))
    patch = jnp.concatenate(cols, axis=-1)                # (TH*OW, KH*KW*Cin_pad)

    # Single deep-K MXU matmul instead of KH*KW shallow ones.
    acc = jnp.dot(patch, w_ref[...], preferred_element_type=jnp.float32)

    # Fused BatchNorm (inference) + optional ReLU, in f32 on the accumulator.
    y = acc * scale_ref[...] + shift_ref[...]
    if is_relu:
        y = jnp.maximum(y, 0.0)
    o_ref[...] = y.astype(o_ref.dtype)


def conv_bn_relu(x_nchw, weight_oihw, gamma, beta, running_mean, running_var,
                 *, stride=1, padding=0, eps=1e-5, is_relu=True):
    """Pallas ConvBnRelu.  x_nchw: (N, Cin, H, W) float32.  Returns (N, Cout, OH, OW)."""
    N, Cin, H, W = x_nchw.shape
    Cout, Cin_w, KH, KW = weight_oihw.shape
    assert Cin_w == Cin, "groups != 1 not supported"

    OH = (H + 2 * padding - KH) // stride + 1
    OW = (W + 2 * padding - KW) // stride + 1
    Hp, Wp = H + 2 * padding, W + 2 * padding

    Cin_pad = _round_up(Cin, _LANE)
    Cout_pad = _round_up(Cout, _LANE)
    TH = _pick_row_tile(OH, OW)
    n_row_tiles = OH // TH

    # --- layout prep (one pad each for x / w; channel dims -> lane-dense) ---
    x = jnp.transpose(x_nchw, (0, 2, 3, 1))                       # NHWC
    x = jnp.pad(x, ((0, 0), (padding, padding), (padding, padding),
                    (0, Cin_pad - Cin)))

    w = jnp.transpose(weight_oihw, (2, 3, 1, 0))                  # (KH, KW, Cin, Cout)
    w = jnp.pad(w, ((0, 0), (0, 0), (0, Cin_pad - Cin), (0, Cout_pad - Cout)))
    w = w.reshape(KH * KW * Cin_pad, Cout_pad)                    # im2col order

    inv = gamma / jnp.sqrt(running_var + eps)
    scale = jnp.pad(inv, (0, Cout_pad - Cout)).reshape(1, Cout_pad)
    shift = jnp.pad(beta - running_mean * inv,
                    (0, Cout_pad - Cout)).reshape(1, Cout_pad)

    kernel = functools.partial(_conv_bn_relu_kernel,
                               KH=KH, KW=KW, TH=TH, OW=OW,
                               stride=stride, is_relu=is_relu)

    out_flat = pl.pallas_call(
        kernel,
        out_shape=jax.ShapeDtypeStruct((N, OH * OW, Cout_pad), x.dtype),
        grid_spec=pltpu.PrefetchScalarGridSpec(
            num_scalar_prefetch=0,
            grid=(N, n_row_tiles),
            in_specs=[
                # Full padded slab per batch; block index constant along the
                # row-tile axis -> DMA'd once per batch element.
                pl.BlockSpec((None, Hp, Wp, Cin_pad), lambda b, t: (b, 0, 0, 0)),
                pl.BlockSpec((KH * KW * Cin_pad, Cout_pad), lambda b, t: (0, 0)),
                pl.BlockSpec((1, Cout_pad), lambda b, t: (0, 0)),
                pl.BlockSpec((1, Cout_pad), lambda b, t: (0, 0)),
            ],
            out_specs=pl.BlockSpec((None, TH * OW, Cout_pad),
                                   lambda b, t: (b, t, 0)),
        ),
        compiler_params=pltpu.CompilerParams(
            dimension_semantics=("parallel", "arbitrary")),
    )(x, w, scale, shift)

    # Un-flatten spatial dims, crop the lane padding, back to NCHW.
    out = out_flat[:, :, :Cout].reshape(N, OH, OW, Cout)
    return jnp.transpose(out, (0, 3, 1, 2))


def _reference(x_nchw, weight_oihw, gamma, beta, running_mean, running_var,
               *, stride, padding, eps, is_relu):
    y = jax.lax.conv_general_dilated(
        x_nchw, weight_oihw,
        window_strides=(stride, stride),
        padding=[(padding, padding), (padding, padding)],
        dimension_numbers=("NCHW", "OIHW", "NCHW"))
    s = (gamma / jnp.sqrt(running_var + eps)).reshape(1, -1, 1, 1)
    b = (beta - running_mean * gamma / jnp.sqrt(running_var + eps)).reshape(1, -1, 1, 1)
    y = y * s + b
    if is_relu:
        y = jnp.maximum(y, 0.0)
    return y


if __name__ == "__main__":
    # Module config: ConvBnRelu(in_channels=4, out_channels=8, kernel_size=3,
    #                           stride=1, padding=1, groups=1, is_relu=True)
    N, Cin, H, W = 2, 4, 16, 16
    Cout, K = 8, 3
    stride, padding, is_relu, eps = 1, 1, True, 1e-5

    key = jax.random.PRNGKey(0)
    kx, kw, kg, kb, km, kv = jax.random.split(key, 6)
    x = jax.random.normal(kx, (N, Cin, H, W), dtype=jnp.float32)
    weight = jax.random.normal(kw, (Cout, Cin, K, K), dtype=jnp.float32) * 0.1
    gamma = 1.0 + 0.1 * jax.random.normal(kg, (Cout,), dtype=jnp.float32)
    beta = 0.1 * jax.random.normal(kb, (Cout,), dtype=jnp.float32)
    running_mean = 0.1 * jax.random.normal(km, (Cout,), dtype=jnp.float32)
    running_var = jnp.abs(jax.random.normal(kv, (Cout,), dtype=jnp.float32)) + 0.5

    out = conv_bn_relu(x, weight, gamma, beta, running_mean, running_var,
                       stride=stride, padding=padding, eps=eps, is_relu=is_relu)
    out = jax.block_until_ready(out)

    ref = _reference(x, weight, gamma, beta, running_mean, running_var,
                     stride=stride, padding=padding, eps=eps, is_relu=is_relu)
    np.testing.assert_allclose(np.asarray(out), np.asarray(ref), rtol=1e-4, atol=1e-4)

    print("KERNEL_OK")
</pallas_src>

<mosaic_0001>
module attributes {stable_mosaic.version = 11 : i64} {
  func.func @_conv_bn_relu_kernel(%arg0: i32, %arg1: i32, %arg2: memref<1x18x18x128xf32, #tpu.memory_space<vmem>>, %arg3: memref<1152x128xf32, #tpu.memory_space<vmem>>, %arg4: memref<1x128xf32, #tpu.memory_space<vmem>>, %arg5: memref<1x128xf32, #tpu.memory_space<vmem>>, %arg6: memref<1x128x128xf32, #tpu.memory_space<vmem>>) attributes {dimension_semantics = [#tpu.dimension_semantics<parallel>, #tpu.dimension_semantics<arbitrary>], iteration_bounds = array<i64: 2, 2>, scalar_prefetch = 0 : i64, scratch_operands = 0 : i64, tpu.core_type = #tpu.core_type<tc>, window_params = [{transform_indices = @transform_0, window_bounds = array<i64: 1, 18, 18, 128>}, {pipeline_mode = #tpu.pipeline_mode<synchronous>, transform_indices = @transform_1, window_bounds = array<i64: 1152, 128>}, {pipeline_mode = #tpu.pipeline_mode<synchronous>, transform_indices = @transform_2, window_bounds = array<i64: 1, 128>}, {pipeline_mode = #tpu.pipeline_mode<synchronous>, transform_indices = @transform_3, window_bounds = array<i64: 1, 128>}, {transform_indices = @transform_4, window_bounds = array<i64: 1, 128, 128>}]} {
    %c8_i32 = arith.constant 8 : i32
    %0 = arith.muli %arg1, %c8_i32 : i32
    %1 = tpu.assume_multiple %0, 8 : i32
    %c0 = arith.constant 0 : index
    %2 = arith.index_cast %1 : i32 to index
    %c0_0 = arith.constant 0 : index
    %c0_1 = arith.constant 0 : index
    %3 = vector.load %arg2[%c0, %2, %c0_0, %c0_1] : memref<1x18x18x128xf32, #tpu.memory_space<vmem>>, vector<1x10x18x128xf32>
    %4 = vector.shape_cast %3 : vector<1x10x18x128xf32> to vector<10x18x128xf32>
    %5 = vector.extract_strided_slice %4 {offsets = [0, 0, 0], sizes = [8, 16, 128], strides = [1, 1, 1]} : vector<10x18x128xf32> to vector<8x16x128xf32>
    %6 = vector.shape_cast %5 : vector<8x16x128xf32> to vector<128x128xf32>
    %7 = vector.extract_strided_slice %4 {offsets = [0, 1, 0], sizes = [8, 16, 128], strides = [1, 1, 1]} : vector<10x18x128xf32> to vector<8x16x128xf32>
    %8 = vector.shape_cast %7 : vector<8x16x128xf32> to vector<128x128xf32>
    %9 = vector.extract_strided_slice %4 {offsets = [0, 2, 0], sizes = [8, 16, 128], strides = [1, 1, 1]} : vector<10x18x128xf32> to vector<8x16x128xf32>
    %10 = vector.shape_cast %9 : vector<8x16x128xf32> to vector<128x128xf32>
    %11 = vector.extract_strided_slice %4 {offsets = [1, 0, 0], sizes = [8, 16, 128], strides = [1, 1, 1]} : vector<10x18x128xf32> to vector<8x16x128xf32>
    %12 = vector.shape_cast %11 : vector<8x16x128xf32> to vector<128x128xf32>
    %13 = vector.extract_strided_slice %4 {offsets = [1, 1, 0], sizes = [8, 16, 128], strides = [1, 1, 1]} : vector<10x18x128xf32> to vector<8x16x128xf32>
    %14 = vector.shape_cast %13 : vector<8x16x128xf32> to vector<128x128xf32>
    %15 = vector.extract_strided_slice %4 {offsets = [1, 2, 0], sizes = [8, 16, 128], strides = [1, 1, 1]} : vector<10x18x128xf32> to vector<8x16x128xf32>
    %16 = vector.shape_cast %15 : vector<8x16x128xf32> to vector<128x128xf32>
    %17 = vector.extract_strided_slice %4 {offsets = [2, 0, 0], sizes = [8, 16, 128], strides = [1, 1, 1]} : vector<10x18x128xf32> to vector<8x16x128xf32>
    %18 = vector.shape_cast %17 : vector<8x16x128xf32> to vector<128x128xf32>
    %19 = vector.extract_strided_slice %4 {offsets = [2, 1, 0], sizes = [8, 16, 128], strides = [1, 1, 1]} : vector<10x18x128xf32> to vector<8x16x128xf32>
    %20 = vector.shape_cast %19 : vector<8x16x128xf32> to vector<128x128xf32>
    %21 = vector.extract_strided_slice %4 {offsets = [2, 2, 0], sizes = [8, 16, 128], strides = [1, 1, 1]} : vector<10x18x128xf32> to vector<8x16x128xf32>
    %22 = vector.shape_cast %21 : vector<8x16x128xf32> to vector<128x128xf32>
    %23 = tpu.concatenate %6, %8, %10, %12, %14, %16, %18, %20, %22 in 1 : vector<128x128xf32>, vector<128x128xf32>, vector<128x128xf32>, vector<128x128xf32>, vector<128x128xf32>, vector<128x128xf32>, vector<128x128xf32>, vector<128x128xf32>, vector<128x128xf32> -> vector<128x1152xf32>
    %c0_2 = arith.constant 0 : index
    %c0_3 = arith.constant 0 : index
    %24 = vector.load %arg3[%c0_2, %c0_3] : memref<1152x128xf32, #tpu.memory_space<vmem>>, vector<1152x128xf32>
    %cst = arith.constant dense<0.000000e+00> : vector<128x128xf32>
    %25 = tpu.matmul %23, %24, %cst {dimension_numbers = #tpu.dot_dimension_numbers<[1], [0], [0], [1], [0, 0, 1, 1], [], []>} : vector<128x1152xf32>, vector<1152x128xf32>, vector<128x128xf32> -> vector<128x128xf32>
    %c0_4 = arith.constant 0 : index
    %c0_5 = arith.constant 0 : index
    %26 = vector.load %arg4[%c0_4, %c0_5] : memref<1x128xf32, #tpu.memory_space<vmem>>, vector<1x128xf32>
    %27 = vector.broadcast %26 : vector<1x128xf32> to vector<128x128xf32>
    %28 = arith.mulf %25, %27 : vector<128x128xf32>
    %c0_6 = arith.constant 0 : index
    %c0_7 = arith.constant 0 : index
    %29 = vector.load %arg5[%c0_6, %c0_7] : memref<1x128xf32, #tpu.memory_space<vmem>>, vector<1x128xf32>
    %30 = vector.broadcast %29 : vector<1x128xf32> to vector<128x128xf32>
    %31 = arith.addf %28, %30 : vector<128x128xf32>
    %cst_8 = arith.constant 0.000000e+00 : f32
    %32 = vector.broadcast %cst_8 : f32 to vector<128x128xf32>
    %33 = arith.maximumf %31, %32 : vector<128x128xf32>
    %c0_9 = arith.constant 0 : index
    %c0_10 = arith.constant 0 : index
    %c0_11 = arith.constant 0 : index
    %34 = vector.load %arg6[%c0_9, %c0_10, %c0_11] : memref<1x128x128xf32, #tpu.memory_space<vmem>>, vector<1x128x128xf32>
    %35 = vector.shape_cast %34 : vector<1x128x128xf32> to vector<128x128xf32>
    %36 = vector.shape_cast %33 : vector<128x128xf32> to vector<1x128x128xf32>
    tpu.vector_store %arg6[%c0_9, %c0_10, %c0_11], %36 {strides = array<i32>} : memref<1x128x128xf32, #tpu.memory_space<vmem>>, vector<1x128x128xf32>,
    return
  }
  func.func @transform_0(%arg0: i32, %arg1: i32) -> (i32, i32, i32, i32) {
    %c0_i32 = arith.constant 0 : i32
    %c0_i32_0 = arith.constant 0 : i32
    %c0_i32_1 = arith.constant 0 : i32
    %c0_i32_2 = arith.constant 0 : i32
    return %arg0, %c0_i32, %c0_i32_0, %c0_i32_1 : i32, i32, i32, i32
  }
  func.func @transform_1(%arg0: i32, %arg1: i32) -> (i32, i32) {
    %c0_i32 = arith.constant 0 : i32
    %c0_i32_0 = arith.constant 0 : i32
    %c0_i32_1 = arith.constant 0 : i32
    return %c0_i32, %c0_i32_0 : i32, i32
  }
  func.func @transform_2(%arg0: i32, %arg1: i32) -> (i32, i32) {
    %c0_i32 = arith.constant 0 : i32
    %c0_i32_0 = arith.constant 0 : i32
    %c0_i32_1 = arith.constant 0 : i32
    return %c0_i32, %c0_i32_0 : i32, i32
  }
  func.func @transform_3(%arg0: i32, %arg1: i32) -> (i32, i32) {
    %c0_i32 = arith.constant 0 : i32
    %c0_i32_0 = arith.constant 0 : i32
    %c0_i32_1 = arith.constant 0 : i32
    return %c0_i32, %c0_i32_0 : i32, i32
  }
  func.func @transform_4(%arg0: i32, %arg1: i32) -> (i32, i32, i32) {
    %c0_i32 = arith.constant 0 : i32
    %c0_i32_0 = arith.constant 0 : i32
    return %arg0, %arg1, %c0_i32 : i32, i32, i32
  }
}

</mosaic_0001>

<bundles_post_ra>
// kernel: tpu_custom_call.1
= control target key start
LH: loop header
LB: loop body
LE: loop exit
PB: predicated region body
PF: predicated region fallthrough
CT: control target
= control target key end

     0   :  { %9 = vsyncpa [#allocation3], 0  ;;  %s3419_s0 = inlined_call_operand.vmem [shape: f32[2,18,18,128], index: 0, kind: input, shape index: {}]   ;;  %s3420_s1 = inlined_call_operand.vmem [shape: f32[1152,128], index: 1, kind: input, shape index: {}]   ;;  %s3421_s2 = inlined_call_operand.vmem [shape: f32[1,128], index: 2, kind: input, shape index: {}]   ;;  %s3422_s3 = inlined_call_operand.vmem [shape: f32[1,128], index: 3, kind: input, shape index: {}]   ;;  %s3423_s4 = inlined_call_operand.hbm [shape: f32[2,256,128], index: 4, kind: output, shape index: {}]  }
   0x1   :  { %11 = vsyncpa [#allocation3 + $0x1], 0  ;;  %s2256_s15 = smov 0   ;;  %s2258_s16 = smov 0  }
   0x2   :  { %s2260_s17 = smov 0   ;;  %s2262_s18 = smov 0  }
   0x3   :  { %s2264_s19 = smov 0   ;;  %s2266_s20 = smov 0  }
   0x4   :  { %s2268_s21 = smov 0   ;;  %s2270_s22 = smov 0  }
   0x5 LB: > { %s1457_s23 = sadd.s32 4294967295, %s2226_s22   ;;  %s1458_s24 = sadd.s32 4294967294, %s2226_s22   ;;  %s2226_s22 = sphi %s2270_s22, %s17_s22   ;;  %s2222_s21 = sphi %s2268_s21, %s3432_s21   ;;  %s2218_s20 = sphi %s2266_s20, %s3431_s20   ;;  %s2214_s19 = sphi %s2264_s19, %s3430_s19   ;;  %s2210_s18 = sphi %s2262_s18, %s3429_s18   ;;  %s2206_s17 = sphi %s2260_s17, %s3428_s17   ;;  %s2202_s16 = sphi %s2258_s16, %s3427_s16   ;;  %s2198_s15 = sphi %s2256_s15, %s3426_s15  }
   0x6   : > { %s26_s25 = sadd.s32 1, %s2218_s20  ;;  %s29_s26 = sadd.s32 1, %s2222_s21 }
   0x7   : > { %p27_p0 = scmp.ge.s32.totalorder %s26_s25, 2  ;;  %p137_p1 = scmp.ne.s32.totalorder %s2206_s17, %s2202_s16 }
   0x8   : > { %p138_p2 = scmp.eq.s32.totalorder %s1457_s23, 3  ;;  %p143_p5 = scmp.ne.s32.totalorder %s2202_s16, %s2198_s15 }
   0x9   : > { %s3434_s25 = smov (%p27_p0, %s26_s25), 0  ;;  %s3436_s26 = smov (!%p27_p0, %s29_s26), %s2222_s21 }
   0xa   : > { %s123_s27 = ssub.s32 %s2218_s20, %s3434_s25  ;;  %p2307_p3 = por %p138_p2, %p137_p1 }
   0xb   : > { %p31_p4 = scmp.ge.s32.totalorder %s3436_s26, 2  ;;  %p144_p6 = scmp.eq.s32.totalorder %s1458_s24, 3 }
   0xc   : > { %p1461_p7 = scmp.ge.s32.totalorder %s2226_s22, 1  ;;  %p179_p9 = scmp.lt.s32.totalorder %s2226_s22, 5 }
   0xd   : > { %s3438_s26 = smov (%p31_p4, %s3436_s26), 0  ;;  %p2316_p8 = por %p144_p6, %p143_p5 }
   0xe   : > { %s122_s30 = ssub.s32 %s2222_s21, %s3438_s26  ;;  %s127_s5 = sadd.s32 1, %s2206_s17 }
   0xf   : > { %s124_s6 = sor.u32 %s123_s27, %s122_s30  ;;  %p180_p10 = pnand %p1461_p7, %p179_p9 }
  0x10   : > { %p125_p11 = scmp.eq.s32.totalorder %s124_s6, 0  ;;  %v432_v0 = vld [vmem:[%s3420_s1 + $0x80] sm:$0xff] (!%p180_p10)  ;;  %v433_v1 = vld [vmem:[%s3420_s1 + $0x88] sm:$0xff] (!%p180_p10)  ;;  %v434_v11 = vld [vmem:[%s3420_s1 + $0x90] sm:$0xff] (!%p180_p10)  ;;  %p205_p12 = scmp.lt.s32.totalorder (!%p180_p10), %s2214_s19, 1  ;;  %vm268_vm0 = vcmask (!%p180_p10), 1046528  }
  0x11   : > { %183 = sbr.rel (%p180_p10) target bundleno = 431 (0x1af), region = 36  ;;  %v464_v2 = vld [vmem:[%s3420_s1 + $0x180] sm:$0xff] (!%p180_p10)  ;;  %v1882_v3 = vpack.c.bf16 (!%p180_p10), %v433_v1, %v432_v0  ;;  %v465_v4 = vld [vmem:[%s3420_s1 + $0x188] sm:$0xff] (!%p180_p10)  ;;  %v435_v13 = vld [vmem:[%s3420_s1 + $0x98] sm:$0xff] (!%p180_p10)  ;;  %vm325_vm1 = vcmask (!%p180_p10), 1045504   ;;  %s202_s9 = sand.u32 (!%p180_p10), 1, %s2202_s16  }
  0x12   : > { %s2325_s7 = scalar_select %p125_p11, %s2206_s17, %s127_s5  }
  0x13   : > { %v416_v5 = vld [vmem:[%s3420_s1] sm:$0xff] (!%p180_p10)  ;;  %v417_v6 = vld [vmem:[%s3420_s1 + $0x8] sm:$0xff] (!%p180_p10)  ;;  %v1914_v7 = vpack.c.bf16 (!%p180_p10), %v465_v4, %v464_v2  ;;  %1883 = vmatprep.subr.bf16.mxu0 (!%p180_p10), %v1882_v3  ;;  %v466_v14 = vld [vmem:[%s3420_s1 + $0x190] sm:$0xff] (!%p180_p10)  ;;  %v1886_v16 = vpack.c.bf16 (!%p180_p10), %v435_v13, %v434_v11  ;;  %s1465_s5 = smul.u32 (!%p180_p10), 192, %s2210_s18  ;;  %s1469_s23 = sshll.u32 (!%p180_p10), %s2210_s18, 4 }
  0x14   : > { %v1884_v8 = vpack.c.bf16 (!%p180_p10), %v417_v6, %v416_v5  ;;  %v448_v9 = vld [vmem:[%s3420_s1 + $0x100] sm:$0xff] (!%p180_p10)  ;;  %v449_v10 = vld [vmem:[%s3420_s1 + $0x108] sm:$0xff] (!%p180_p10)  ;;  %v467_v15 = vld [vmem:[%s3420_s1 + $0x198] sm:$0xff] (!%p180_p10)  ;;  %s1470_s24 = sshll.u32 (!%p180_p10), %s2214_s19, 5  ;;  %s3367_s10 = scalar_lea.sflag (!%p180_p10), [#allocation3], %s202_s9 }
  0x15   : > { %v1916_v12 = vpack.c.bf16 (!%p180_p10), %v449_v10, %v448_v9  ;;  %1915 = vmatprep.subr.bf16.mxu1 (!%p180_p10), %v1914_v7  ;;  %v1918_v17 = vpack.c.bf16 (!%p180_p10), %v467_v15, %v466_v14  ;;  %v418_v18 = vld [vmem:[%s3420_s1 + $0x10] sm:$0xff] (!%p180_p10)  ;;  %v419_v19 = vld [vmem:[%s3420_s1 + $0x18] sm:$0xff] (!%p180_p10)  ;;  %v436_v23 = vld [vmem:[%s3420_s1 + $0xa0] sm:$0xff] (!%p180_p10)  ;;  %s1376_s18 = sadd.s32 (!%p180_p10), %s1470_s24, %s1469_s23 }
  0x16   : > { %1885 = vmatpush3.bf16.msra.mxu0 (!%p180_p10), %v1884_v8  ;;  %v450_v20 = vld [vmem:[%s3420_s1 + $0x110] sm:$0xff] (!%p180_p10)  ;;  %v1888_v21 = vpack.c.bf16 (!%p180_p10), %v419_v19, %v418_v18  ;;  %v451_v22 = vld [vmem:[%s3420_s1 + $0x118] sm:$0xff] (!%p180_p10)  ;;  %v437_v24 = vld [vmem:[%s3420_s1 + $0xa8] sm:$0xff] (!%p180_p10) }
  0x17   : > { %1917 = vmatpush3.bf16.msra.mxu1 (!%p180_p10), %v1916_v12  ;;  %1887 = vmatprep.subr.bf16.mxu0 (!%p180_p10), %v1886_v16  ;;  %v1920_v25 = vpack.c.bf16 (!%p180_p10), %v451_v22, %v450_v20  ;;  %v1890_v26 = vpack.c.bf16 (!%p180_p10), %v437_v24, %v436_v23  ;;  %v468_v27 = vld [vmem:[%s3420_s1 + $0x1a0] sm:$0xff] (!%p180_p10)  ;;  %v469_v28 = vld [vmem:[%s3420_s1 + $0x1a8] sm:$0xff] (!%p180_p10)  ;;  %v438_v35 = vld [vmem:[%s3420_s1 + $0xb0] sm:$0xff] (!%p180_p10) }
  0x18   : > { %1919 = vmatprep.subr.bf16.mxu1 %v1918_v17  ;;  %v420_v29 = vld [vmem:[%s3420_s1 + $0x20] sm:$0xff]  ;;  %v1922_v30 = vpack.c.bf16 %v469_v28, %v468_v27  ;;  %v421_v31 = vld [vmem:[%s3420_s1 + $0x28] sm:$0xff]  ;;  %s2403_s27 = scalar_select %p205_p12, %s2214_s19, 1  ;;  %v439_v36 = vld [vmem:[%s3420_s1 + $0xb8] sm:$0xff] }
  0x19   : > { %v452_v32 = vld [vmem:[%s3420_s1 + $0x120] sm:$0xff]  ;;  %v453_v33 = vld [vmem:[%s3420_s1 + $0x128] sm:$0xff]  ;;  %v1892_v34 = vpack.c.bf16 %v421_v31, %v420_v29  ;;  %v470_v37 = vld [vmem:[%s3420_s1 + $0x1b0] sm:$0xff]  ;;  %v1894_v39 = vpack.c.bf16 %v439_v36, %v438_v35  ;;  %s1471_s19 = sshll.u32 %s1376_s18, 7 }
  0x1a   : > { %1889 = vmatpush3.bf16.msra.mxu0 %v1888_v21  ;;  %v1924_v38 = vpack.c.bf16 %v453_v33, %v452_v32  ;;  %v471_v40 = vld [vmem:[%s3420_s1 + $0x1b8] sm:$0xff]  ;;  %v422_v41 = vld [vmem:[%s3420_s1 + $0x30] sm:$0xff]  ;;  %v440_v46 = vld [vmem:[%s3420_s1 + $0xc0] sm:$0xff]  ;;  %s2058_s30 = smul.u32 432, %s2403_s27  ;;  %s1462_s27 = sshll.u32 %s202_s9, 7 }
  0x1b   : > { %1921 = vmatpush3.bf16.msra.mxu1 %v1920_v25  ;;  %1891 = vmatprep.subr.bf16.mxu0 %v1890_v26  ;;  %v423_v42 = vld [vmem:[%s3420_s1 + $0x38] sm:$0xff]  ;;  %v1926_v43 = vpack.c.bf16 %v471_v40, %v470_v37  ;;  %v454_v44 = vld [vmem:[%s3420_s1 + $0x130] sm:$0xff]  ;;  %v441_v47 = vld [vmem:[%s3420_s1 + $0xc8] sm:$0xff]  ;;  %s3309_s13 = scalar_lea.vmem [#allocation2], %s1462_s27 }
  0x1c   : > { %1923 = vmatprep.subr.bf16.mxu1 %v1922_v30  ;;  %v455_v45 = vld [vmem:[%s3420_s1 + $0x138] sm:$0xff]  ;;  %v472_v48 = vld [vmem:[%s3420_s1 + $0x1c0] sm:$0xff]  ;;  %v473_v49 = vld [vmem:[%s3420_s1 + $0x1c8] sm:$0xff]  ;;  %v1896_v50 = vpack.c.bf16 %v423_v42, %v422_v41  ;;  %v1898_v52 = vpack.c.bf16 %v441_v47, %v440_v46  ;;  %s209_s12 = scalar_lea.vmem %s3419_s0, %s2058_s30  ;;  %s1379_s6 = sshll.u32 %s3309_s13, 4  ;;  %s3359_s6 = int_to_ptr.vmem [resolvable:$true] %s1379_s6 }
  0x1d   : > { %v1928_v51 = vpack.c.bf16 %v455_v45, %v454_v44  ;;  %v424_v53 = vld [vmem:[%s3420_s1 + $0x40] sm:$0xff]  ;;  %v425_v54 = vld [vmem:[%s3420_s1 + $0x48] sm:$0xff]  ;;  %v1930_v56 = vpack.c.bf16 %v473_v49, %v472_v48  ;;  %v442_v58 = vld [vmem:[%s3420_s1 + $0xd0] sm:$0xff]  ;;  %s2488_s14 = scalar_lea.vmem %s209_s12, %s1465_s5  ;;  %s3357_s30 = scalar_lea.hbm %s3423_s4, %s1471_s19 }
  0x1e   : > { %1893 = vmatpush3.bf16.msra.mxu0 %v1892_v34  ;;  %v456_v55 = vld [vmem:[%s3420_s1 + $0x140] sm:$0xff]  ;;  %v457_v57 = vld [vmem:[%s3420_s1 + $0x148] sm:$0xff]  ;;  %v443_v59 = vld [vmem:[%s3420_s1 + $0xd8] sm:$0xff]  ;;  %v1900_v62 = vpack.c.bf16 %v425_v54, %v424_v53  ;;  %s2132_s11 = scalar_lea.vmem %s3359_s6, 2048  ;;  %s2228_s5 = smov [#allocation2]  }
  0x1f   : > { %1925 = vmatpush3.bf16.msra.mxu1 %v1924_v38  ;;  %1895 = vmatprep.subr.bf16.mxu0 %v1894_v39  ;;  %v474_v60 = vld [vmem:[%s3420_s1 + $0x1d0] sm:$0xff]  ;;  %v475_v61 = vld [vmem:[%s3420_s1 + $0x1d8] sm:$0xff]  ;;  %v1932_v63 = vpack.c.bf16 %v457_v57, %v456_v55  ;;  %v1902_v0 = vpack.c.bf16 %v443_v59, %v442_v58  ;;  %v444_v6 = vld [vmem:[%s3420_s1 + $0xe0] sm:$0xff]  ;;  %p2133_p13 = scmp.ne.s32.totalorder %s3359_s6, %s2132_s11  ;;  %s2136_s12 = sshll.u32 %s2228_s5, 4  ;;  %s2137_s12 = int_to_ptr.vmem [resolvable:$false] %s2136_s12 }
  0x20   : > { %1927 = vmatprep.subr.bf16.mxu1 %v1926_v43  ;;  %v426_v1 = vld [vmem:[%s3420_s1 + $0x50] sm:$0xff]  ;;  %v427_v2 = vld [vmem:[%s3420_s1 + $0x58] sm:$0xff]  ;;  %v1934_v4 = vpack.c.bf16 %v475_v61, %v474_v60  ;;  %v445_v7 = vld [vmem:[%s3420_s1 + $0xe8] sm:$0xff]  ;;  %s2138_s27 = scalar_lea.vmem %s2137_s12, 4096  ;;  %p2139_p2 = scmp.lt.s32.totalorder %s3359_s6, %s2137_s12 }
  0x21   : > { %v458_v3 = vld [vmem:[%s3420_s1 + $0x150] sm:$0xff]  ;;  %v459_v5 = vld [vmem:[%s3420_s1 + $0x158] sm:$0xff]  ;;  %v476_v8 = vld [vmem:[%s3420_s1 + $0x1e0] sm:$0xff]  ;;  %v1904_v10 = vpack.c.bf16 %v427_v2, %v426_v1  ;;  %v1906_v15 = vpack.c.bf16 %v445_v7, %v444_v6  ;;  %p2134_p0 = pnand %p2133_p13, %p2307_p3  ;;  %p2140_p4 = scmp.lt.s32.totalorder %s2138_s27, %s2132_s11 }
  0x22   : > { %1897 = vmatpush3.bf16.msra.mxu0 %v1896_v50  ;;  %v477_v9 = vld [vmem:[%s3420_s1 + $0x1e8] sm:$0xff]  ;;  %v428_v11 = vld [vmem:[%s3420_s1 + $0x60] sm:$0xff]  ;;  %v1936_v14 = vpack.c.bf16 %v459_v5, %v458_v3  ;;  %v446_v20 = vld [vmem:[%s3420_s1 + $0xf0] sm:$0xff] }
  0x23   : > { %1929 = vmatpush3.bf16.msra.mxu1 %v1928_v51  ;;  %1899 = vmatprep.subr.bf16.mxu0 %v1898_v52  ;;  %v429_v12 = vld [vmem:[%s3420_s1 + $0x68] sm:$0xff]  ;;  %v460_v13 = vld [vmem:[%s3420_s1 + $0x160] sm:$0xff]  ;;  %v1938_v19 = vpack.c.bf16 %v477_v9, %v476_v8  ;;  %v447_v21 = vld [vmem:[%s3420_s1 + $0xf8] sm:$0xff]  ;;  %p2135_p1 = pneg %p2134_p0  ;;  %p2141_p5 = por %p2140_p4, %p2139_p2 }
  0x24   : > { %1931 = vmatprep.subr.bf16.mxu1 %v1930_v56  ;;  %v461_v16 = vld [vmem:[%s3420_s1 + $0x168] sm:$0xff]  ;;  %v2509_v17 = vld [vmem:[%s2488_s14] sm:$0xff]  ;;  %v2523_v24 = vld [vmem:[%s2488_s14 + $0x18] sm:$0xff]  ;;  %v1908_v27 = vpack.c.bf16 %v429_v12, %v428_v11  ;;  %v1910_v30 = vpack.c.bf16 %v447_v21, %v446_v20 }
  0x25   : > { %v2512_v18 = vld [vmem:[%s2488_s14 + $0x8] sm:$0xff]  ;;  %v269_v22 = vrot.slane %v2509_v17, 1  ;;  %v478_v25 = vld [vmem:[%s3420_s1 + $0x1f0] sm:$0xff]  ;;  %v479_v26 = vld [vmem:[%s3420_s1 + $0x1f8] sm:$0xff]  ;;  %769 = vmatprep.mubr.f32.mxu1 %v2523_v24  ;;  %v1940_v29 = vpack.c.bf16 %v461_v16, %v460_v13  ;;  %v326_v43 = vrot.slane %v2509_v17, 2  ;;  %v274_v56 = vrot.slane %v2523_v24, 1  ;;  %p2142_p6 = pnand %p2141_p5, %p2135_p1 }
  0x26   : > { %1901 = vmatpush3.bf16.msra.mxu0 %v1900_v62  ;;  %v270_v23 = vrot.slane %v2512_v18, 1  ;;  %v430_v31 = vld [vmem:[%s3420_s1 + $0x70] sm:$0xff]  ;;  %v431_v32 = vld [vmem:[%s3420_s1 + $0x78] sm:$0xff]  ;;  %v1942_v34 = vpack.c.bf16 %v479_v26, %v478_v25  ;;  %v496_v36 = vld [vmem:[%s3420_s1 + $0x280] sm:$0xff]  ;;  %v327_v44 = vrot.slane %v2512_v18, 2  ;;  %v331_v9 = vrot.slane %v2523_v24, 2 }
  0x27   : > { %1933 = vmatpush3.bf16.msra.mxu1 %v1932_v63  ;;  %1903 = vmatprep.subr.bf16.mxu0 %v1902_v0  ;;  %v462_v33 = vld [vmem:[%s3420_s1 + $0x170] sm:$0xff]  ;;  %v463_v35 = vld [vmem:[%s3420_s1 + $0x178] sm:$0xff]  ;;  %v497_v37 = vld [vmem:[%s3420_s1 + $0x288] sm:$0xff]  ;;  %v1912_v41 = vpack.c.bf16 %v431_v32, %v430_v31 }
  0x28   : > { %1935 = vmatprep.subr.bf16.mxu1 %v1934_v4  ;;  %v271_v28 = vsel %vm268_vm0, %v269_v22, %v270_v23  ;;  %v528_v38 = vld [vmem:[%s3420_s1 + $0x380] sm:$0xff]  ;;  %v529_v39 = vld [vmem:[%s3420_s1 + $0x388] sm:$0xff]  ;;  %v216_v40 = vld [vmem:[%s2488_s14 + $0x10] sm:$0x3]  ;;  %v1944_v42 = vpack.c.bf16 %v463_v35, %v462_v33  ;;  %v1946_v45 = vpack.c.bf16 %v497_v37, %v496_v36  ;;  %v328_v59 = vsel %vm325_vm1, %v326_v43, %v327_v44 }
  0x29   : > { %624 = vmatprep.mubr.f32.mxu0 %v271_v28  ;;  %v480_v46 = vld [vmem:[%s3420_s1 + $0x200] sm:$0xff]  ;;  %v481_v47 = vld [vmem:[%s3420_s1 + $0x208] sm:$0xff]  ;;  %v1978_v48 = vpack.c.bf16 %v529_v39, %v528_v38  ;;  %v272_v51 = vrot.slane %v216_v40, 1  ;;  %v498_v53 = vld [vmem:[%s3420_s1 + $0x290] sm:$0xff]  ;;  %v329_v61 = vrot.slane %v216_v40, 2 }
  0x2a   : > { %1905 = vmatpush3.bf16.msra.mxu0 %v1904_v10  ;;  %v512_v49 = vld [vmem:[%s3420_s1 + $0x300] sm:$0xff]  ;;  %v513_v50 = vld [vmem:[%s3420_s1 + $0x308] sm:$0xff]  ;;  %v499_v54 = vld [vmem:[%s3420_s1 + $0x298] sm:$0xff]  ;;  %v1948_v55 = vpack.c.bf16 %v481_v47, %v480_v46 }
  0x2b   : > { %1937 = vmatpush3.bf16.msra.mxu1 %v1936_v14  ;;  %1907 = vmatprep.subr.bf16.mxu0 %v1906_v15  ;;  %v2573_v52 = vld [vmem:[%s2488_s14 + $0x20] sm:$0xff]  ;;  %v530_v57 = vld [vmem:[%s3420_s1 + $0x390] sm:$0xff]  ;;  %v531_v58 = vld [vmem:[%s3420_s1 + $0x398] sm:$0xff]  ;;  %v1980_v60 = vpack.c.bf16 %v513_v50, %v512_v49  ;;  %v273_v0 = vsel %vm268_vm0, %v270_v23, %v272_v51  ;;  %v1950_v1 = vpack.c.bf16 %v499_v54, %v498_v53 }
  0x2c   : > { %1939 = vmatprep.subr.bf16.mxu1 %v1938_v19  ;;  %v275_v62 = vrot.slane %v2573_v52, 1  ;;  %v482_v63 = vld [vmem:[%s3420_s1 + $0x210] sm:$0xff]  ;;  %v483_v2 = vld [vmem:[%s3420_s1 + $0x218] sm:$0xff]  ;;  %v2601_v4 = vld [vmem:[%s2488_s14 + $0x28] sm:$0x3]  ;;  %v1982_v5 = vpack.c.bf16 %v531_v58, %v530_v57  ;;  %v332_v10 = vrot.slane %v2573_v52, 2  ;;  %v330_v13 = vsel %vm325_vm1, %v327_v44, %v329_v61 }
  0x2d   : > { %v514_v3 = vld [vmem:[%s3420_s1 + $0x310] sm:$0xff]  ;;  %v515_v6 = vld [vmem:[%s3420_s1 + $0x318] sm:$0xff]  ;;  %v500_v7 = vld [vmem:[%s3420_s1 + $0x2a0] sm:$0xff]  ;;  %v1952_v16 = vpack.c.bf16 %v483_v2, %v482_v63 }
  0x2e   : > { %1909 = vmatpush3.bf16.msra.mxu0 %v1908_v27  ;;  %v501_v8 = vld [vmem:[%s3420_s1 + $0x2a8] sm:$0xff]  ;;  %v532_v11 = vld [vmem:[%s3420_s1 + $0x3a0] sm:$0xff]  ;;  %v2623_v14 = vsel %vm268_vm0, %v274_v56, %v275_v62  ;;  %v2626_v15 = vld [vmem:[%s2488_s14 + $0x30] sm:$0xff]  ;;  %v1984_v20 = vpack.c.bf16 %v515_v6, %v514_v3 }
  0x2f   : > { %1941 = vmatpush3.bf16.msra.mxu1 %v1940_v29  ;;  %1911 = vmatprep.subr.bf16.mxu0 %v1910_v30  ;;  %v533_v12 = vld [vmem:[%s3420_s1 + $0x3a8] sm:$0xff]  ;;  %v2630_v19 = vld [vmem:[%s2488_s14 + $0x38] sm:$0xff]  ;;  %v1954_v21 = vpack.c.bf16 %v501_v8, %v500_v7  ;;  %v484_v22 = vld [vmem:[%s3420_s1 + $0x220] sm:$0xff]  ;;  %v279_v30 = vrot.slane %v2626_v15, 1 }
  0x30   : > { %1943 = vmatprep.subr.bf16.mxu1 %v1942_v34  ;;  %v485_v23 = vld [vmem:[%s3420_s1 + $0x228] sm:$0xff]  ;;  %v516_v25 = vld [vmem:[%s3420_s1 + $0x320] sm:$0xff]  ;;  %v1986_v26 = vpack.c.bf16 %v533_v12, %v532_v11  ;;  %v502_v28 = vld [vmem:[%s3420_s1 + $0x2b0] sm:$0xff]  ;;  %v334_v34 = vrot.slane %v2601_v4, 2  ;;  %v280_v35 = vrot.slane %v2630_v19, 1  ;;  %v337_v47 = vrot.slane %v2630_v19, 2 }
  0x31   : > { %v517_v27 = vld [vmem:[%s3420_s1 + $0x328] sm:$0xff]  ;;  %v503_v29 = vld [vmem:[%s3420_s1 + $0x2b8] sm:$0xff]  ;;  %v534_v31 = vld [vmem:[%s3420_s1 + $0x3b0] sm:$0xff]  ;;  %v1956_v36 = vpack.c.bf16 %v485_v23, %v484_v22 }
  0x32   : > { %1913 = vmatpush3.bf16.msra.mxu0 %v1912_v41  ;;  %v535_v32 = vld [vmem:[%s3420_s1 + $0x3b8] sm:$0xff]  ;;  %v2670_v37 = vld [vmem:[%s2488_s14 + $0x40] sm:$0x3]  ;;  %v1988_v38 = vpack.c.bf16 %v517_v27, %v516_v25  ;;  %v1958_v39 = vpack.c.bf16 %v503_v29, %v502_v28  ;;  %v486_v40 = vld [vmem:[%s3420_s1 + $0x230] sm:$0xff]  ;;  %v2703_v50 = vsel %vm325_vm1, %v332_v10, %v334_v34  ;;  %v2706_v51 = vsel %vm268_vm0, %v279_v30, %v280_v35 }
  0x33   : > { %1945 = vmatpush3.bf16.msra.mxu1 %v1944_v42  ;;  %1947 = vmatprep.subr.bf16.mxu0 %v1946_v45  ;;  %v487_v41 = vld [vmem:[%s3420_s1 + $0x238] sm:$0xff]  ;;  %v518_v42 = vld [vmem:[%s3420_s1 + $0x330] sm:$0xff]  ;;  %v1990_v43 = vpack.c.bf16 %v535_v32, %v534_v31  ;;  %v504_v45 = vld [vmem:[%s3420_s1 + $0x2c0] sm:$0xff]  ;;  %v282_v54 = vrot.slane %v2670_v37, 1 }
  0x34   : > { %1979 = vmatprep.subr.bf16.mxu1 %v1978_v48  ;;  %v519_v44 = vld [vmem:[%s3420_s1 + $0x338] sm:$0xff]  ;;  %v505_v46 = vld [vmem:[%s3420_s1 + $0x2c8] sm:$0xff]  ;;  %v536_v48 = vld [vmem:[%s3420_s1 + $0x3c0] sm:$0xff]  ;;  %v1960_v56 = vpack.c.bf16 %v487_v41, %v486_v40 }
  0x35   : > { %625 = vmatmul.mubr.f32.vlgmr.msra.gmra.mrb[0].mxu0 %v2509_v17  ;;  %v277_v17 = vrot.slane %v2601_v4, 1  ;;  %v537_v49 = vld [vmem:[%s3420_s1 + $0x3c8] sm:$0xff]  ;;  %v1992_v57 = vpack.c.bf16 %v519_v44, %v518_v42  ;;  %v2716_v58 = vld [vmem:[%s2488_s14 + $0x58] sm:$0x3]  ;;  %v2729_v63 = vld [vmem:[%s2488_s14 + $0x60] sm:$0xff] }
  0x36   : > { %770 = vmatmul.mubr.f32.vlgmr.msra.gmra.mrb[0].mxu1 %v328_v59  ;;  %1949 = vmatpush3.bf16.msra.mxu0 %v1948_v55  ;;  %v2709_v53 = vld [vmem:[%s2488_s14 + $0x48] sm:$0xff]  ;;  %v2713_v55 = vld [vmem:[%s2488_s14 + $0x50] sm:$0xff]  ;;  %v1962_v59 = vpack.c.bf16 %v505_v46, %v504_v45  ;;  %v507_v3 = vld [vmem:[%s3420_s1 + $0x2d8] sm:$0xff]  ;;  %v289_v22 = vrot.slane %v2729_v63, 1  ;;  %v287_v29 = vrot.slane %v2716_v58, 1  ;;  %v344_v30 = vrot.slane %v2716_v58, 2 }
  0x37   : > { %1981 = vmatpush3.bf16.msra.mxu1 %v1980_v60  ;;  %629 = vmatprep.mubr.f32.mxu0 %v273_v0  ;;  %v2665_v33 = vsel %vm268_vm0, %v275_v62, %v277_v17  ;;  %v488_v60 = vld [vmem:[%s3420_s1 + $0x240] sm:$0xff]  ;;  %v489_v61 = vld [vmem:[%s3420_s1 + $0x248] sm:$0xff]  ;;  %v1994_v0 = vpack.c.bf16 %v537_v49, %v536_v48  ;;  %v506_v2 = vld [vmem:[%s3420_s1 + $0x2d0] sm:$0xff]  ;;  %v284_v4 = vrot.slane %v2709_v53, 1  ;;  %v285_v11 = vrot.slane %v2713_v55, 1 }
  0x38   : > { %774 = vmatprep.mubr.f32.mxu1 %v2573_v52  ;;  %1951 = vmatprep.subr.bf16.mxu0 %v1950_v1  ;;  %v520_v62 = vld [vmem:[%s3420_s1 + $0x340] sm:$0xff]  ;;  %v521_v1 = vld [vmem:[%s3420_s1 + $0x348] sm:$0xff]  ;;  %v538_v6 = vld [vmem:[%s3420_s1 + $0x3d0] sm:$0xff]  ;;  %v1964_v12 = vpack.c.bf16 %v489_v61, %v488_v60  ;;  %v1966_v25 = vpack.c.bf16 %v507_v3, %v506_v2  ;;  %v346_v3 = vrot.slane %v2729_v63, 2 }
  0x39   : > { %630 = vmatmul.mubr.f32.gmra.mrb[2].mxu0 %v2512_v18  ;;  %1983 = vmatprep.subr.bf16.mxu1 %v1982_v5  ;;  %v2654_v18 = vsel %vm325_vm1, %v331_v9, %v332_v10  ;;  %v341_v5 = vrot.slane %v2709_v53, 2  ;;  %v539_v7 = vld [vmem:[%s3420_s1 + $0x3d8] sm:$0xff]  ;;  %v2758_v8 = vld [vmem:[%s3420_s1 + $0x250] sm:$0xff]  ;;  %v2762_v9 = vsel %vm268_vm0, %v280_v35, %v282_v54  ;;  %v339_v10 = vrot.slane %v2670_v37, 2  ;;  %v2792_v27 = vld [vmem:[%s3420_s1 + $0x2e0] sm:$0xff] }
  0x3a   : > { %775 = vmatmul.mubr.f32.gmra.mrb[2].mxu1 %v330_v13  ;;  %634 = vmatprep.mubr.f32.mxu0 %v2623_v14  ;;  %v2769_v13 = vld [vmem:[%s3420_s1 + $0x258] sm:$0xff]  ;;  %v2777_v17 = vld [vmem:[%s2488_s14 + $0xb0] sm:$0xff]  ;;  %v1996_v23 = vpack.c.bf16 %v521_v1, %v520_v62  ;;  %v509_v28 = vld [vmem:[%s3420_s1 + $0x2e8] sm:$0xff]  ;;  %v1998_v31 = vpack.c.bf16 %v539_v7, %v538_v6  ;;  %v2873_v61 = vsel %vm268_vm0, %v285_v11, %v287_v29 }
  0x3b   : > { %779 = vmatprep.mubr.f32.mxu1 %v2626_v15  ;;  %1953 = vmatpush3.bf16.msra.mxu0 %v1952_v16  ;;  %v2774_v16 = vld [vmem:[%s3420_s1 + $0x350] sm:$0xff]  ;;  %v2803_v32 = vld [vmem:[%s3420_s1 + $0x3e0] sm:$0xff]  ;;  %v2809_v35 = vld [vmem:[%s2488_s14 + $0xb8] sm:$0x3]  ;;  %v305_v37 = vrot.slane %v2777_v17, 1  ;;  %v2827_v42 = vsel %vm325_vm1, %v337_v47, %v339_v10  ;;  %v1968_v44 = vpack.c.bf16 %v2769_v13, %v2758_v8  ;;  %v1970_v49 = vpack.c.bf16 %v509_v28, %v2792_v27 }
  0x3c   : > { %1985 = vmatpush3.bf16.msra.mxu1 %v1984_v20  ;;  %1955 = vmatprep.subr.bf16.mxu0 %v1954_v21  ;;  %v342_v20 = vrot.slane %v2713_v55, 2  ;;  %v2781_v21 = vld [vmem:[%s2488_s14 + $0x68] sm:$0xff]  ;;  %v2806_v34 = vld [vmem:[%s2488_s14 + $0xc0] sm:$0xff]  ;;  %v542_v1 = vld [vmem:[%s3420_s1 + $0x3f0] sm:$0xff] }
  0x3d   : > { %635 = vmatmul.mubr.f32.gmra.mrb[4].mxu0 %v2523_v24  ;;  %1987 = vmatprep.subr.bf16.mxu1 %v1986_v26  ;;  %v336_v24 = vrot.slane %v2626_v15, 2  ;;  %v2787_v26 = vld [vmem:[%s3420_s1 + $0x358] sm:$0xff]  ;;  %v385_v40 = vrot.slane %v2806_v34, 1  ;;  %v392_v41 = vrot.slane %v2806_v34, 2  ;;  %v2837_v45 = vld [vmem:[%s3420_s1 + $0x260] sm:$0xff]  ;;  %v2842_v46 = vld [vmem:[%s3420_s1 + $0x268] sm:$0xff] }
  0x3e   : > { %780 = vmatmul.mubr.f32.gmra.mrb[4].mxu1 %v2654_v18  ;;  %639 = vmatprep.mubr.f32.mxu0 %v2665_v33  ;;  %v2000_v48 = vpack.c.bf16 %v2787_v26, %v2774_v16  ;;  %v525_v54 = vld [vmem:[%s3420_s1 + $0x368] sm:$0xff]  ;;  %v2870_v60 = vsel %vm325_vm1, %v341_v5, %v342_v20  ;;  %v290_v62 = vrot.slane %v2781_v21, 1  ;;  %v2883_v2 = vsel %vm325_vm1, %v342_v20, %v344_v30  ;;  %v543_v5 = vld [vmem:[%s3420_s1 + $0x3f8] sm:$0xff]  ;;  %v494_v6 = vld [vmem:[%s3420_s1 + $0x270] sm:$0xff] }
  0x3f   : > { %784 = vmatprep.mubr.f32.mxu1 %v2630_v19  ;;  %1957 = vmatpush3.bf16.msra.mxu0 %v1956_v36  ;;  %v541_v36 = vld [vmem:[%s3420_s1 + $0x3e8] sm:$0xff]  ;;  %v495_v7 = vld [vmem:[%s3420_s1 + $0x278] sm:$0xff]  ;;  %v240_v20 = vld [vmem:[%s2488_s14 + $0xd0] sm:$0x3] }
  0x40   : > { %1989 = vmatpush3.bf16.msra.mxu1 %v1988_v38  ;;  %1959 = vmatprep.subr.bf16.mxu0 %v1958_v39  ;;  %v307_v38 = vrot.slane %v2809_v35, 1  ;;  %v2819_v39 = vld [vmem:[%s2488_s14 + $0xc8] sm:$0xff]  ;;  %v526_v26 = vld [vmem:[%s3420_s1 + $0x370] sm:$0xff]  ;;  %v527_v27 = vld [vmem:[%s3420_s1 + $0x378] sm:$0xff]  ;;  %v388_v28 = vrot.slane %v240_v20, 1 }
  0x41   : > { %640 = vmatmul.mubr.f32.gmra.mrb[6].mxu0 %v2573_v52  ;;  %1991 = vmatprep.subr.bf16.mxu1 %v1990_v43  ;;  %v2745_v52 = vsel %vm325_vm1, %v336_v24, %v337_v47  ;;  %v2830_v43 = vsel %vm268_vm0, %v284_v4, %v285_v11  ;;  %v2847_v24 = vld [vmem:[%s3420_s1 + $0x360] sm:$0xff]  ;;  %v386_v47 = vrot.slane %v2819_v39, 1  ;;  %v2887_v4 = vld [vmem:[%s2488_s14 + $0x70] sm:$0x3]  ;;  %v347_v11 = vrot.slane %v2781_v21, 2 }
  0x42   : > { %785 = vmatmul.mubr.f32.gmra.mrb[6].mxu1 %v2703_v50  ;;  %644 = vmatprep.mubr.f32.mxu0 %v2706_v51  ;;  %v2865_v58 = vsel %vm268_vm0, %v305_v37, %v307_v38  ;;  %v2004_v13 = vpack.c.bf16 %v525_v54, %v2847_v24  ;;  %v544_v38 = vld [vmem:[%s3420_s1 + $0x400] sm:$0xff]  ;;  %v1976_v54 = vpack.c.bf16 %v495_v7, %v494_v6 }
  0x43   : > { %789 = vmatprep.mubr.f32.mxu1 %v2709_v53  ;;  %1961 = vmatpush3.bf16.msra.mxu0 %v1960_v56  ;;  %v510_v56 = vld [vmem:[%s3420_s1 + $0x2f0] sm:$0xff]  ;;  %v2899_v8 = vsel %vm268_vm0, %v385_v40, %v386_v47  ;;  %v545_v40 = vld [vmem:[%s3420_s1 + $0x408] sm:$0xff] }
  0x44   : > { %1993 = vmatpush3.bf16.msra.mxu1 %v1992_v57  ;;  %1963 = vmatprep.subr.bf16.mxu0 %v1962_v59  ;;  %v511_v57 = vld [vmem:[%s3420_s1 + $0x2f8] sm:$0xff]  ;;  %v393_v59 = vrot.slane %v2819_v39, 2 }
  0x45   : > { %645 = vmatmul.mubr.f32.gmra.mrb[8].mxu0 %v2626_v15  ;;  %1995 = vmatprep.subr.bf16.mxu1 %v1994_v0  ;;  %v2002_v0 = vpack.c.bf16 %v541_v36, %v2803_v32  ;;  %v1974_v16 = vpack.c.bf16 %v511_v57, %v510_v56  ;;  %v2930_v32 = vsel %vm268_vm0, %v289_v22, %v290_v62 }
  0x46   : > { %790 = vmatmul.mubr.f32.gmra.mrb[8].mxu1 %v2745_v52  ;;  %649 = vmatprep.mubr.f32.mxu0 %v2762_v9  ;;  %v2902_v10 = vsel %vm325_vm1, %v392_v41, %v393_v59  ;;  %v2006_v36 = vpack.c.bf16 %v543_v5, %v542_v1  ;;  %v243_v41 = vld [vmem:[%s2488_s14 + $0xe8] sm:$0x3]  ;;  %v2944_v22 = vsel %vm268_vm0, %v386_v47, %v388_v28  ;;  %v2961_v47 = vld [vmem:[%s2488_s14 + $0x80] sm:$0xff] }
  0x47   : > { %794 = vmatprep.mubr.f32.mxu1 %v2713_v55  ;;  %1965 = vmatpush3.bf16.msra.mxu0 %v1964_v12  ;;  %v1972_v12 = vpack.c.bf16 %v2842_v46, %v2837_v45  ;;  %v412_v57 = vrot.slane %v243_v41, 2  ;;  %v2963_v1 = vpack.c.bf16 %v545_v40, %v544_v38 }
  0x48   : > { %1997 = vmatpush3.bf16.msra.mxu1 %v1996_v23  ;;  %1967 = vmatprep.subr.bf16.mxu0 %v1966_v25  ;;  %v2911_v23 = vld [vmem:[%s2488_s14 + $0xd8] sm:$0xff]  ;;  %v2914_v25 = vld [vmem:[%s2488_s14 + $0xe0] sm:$0xff] }
  0x49   : > { %650 = vmatmul.mubr.f32.gmra.mrb[10].mxu0 %v2630_v19  ;;  %1999 = vmatprep.subr.bf16.mxu1 %v1998_v31  ;;  %v402_v29 = vrot.slane %v2911_v23, 1  ;;  %v403_v30 = vrot.slane %v2914_v25, 1  ;;  %v395_v31 = vrot.slane %v240_v20, 2  ;;  %v410_v45 = vrot.slane %v2914_v25, 2 }
  0x4a   : > { %795 = vmatmul.mubr.f32.gmra.mrb[10].mxu1 %v2827_v42  ;;  %654 = vmatprep.mubr.f32.mxu0 %v2830_v43  ;;  %v295_v20 = vrot.slane %v2961_v47, 1 }
  0x4b   : > { %799 = vmatprep.mubr.f32.mxu1 %v2729_v63  ;;  %1969 = vmatpush3.bf16.msra.mxu0 %v1968_v44  ;;  %v409_v44 = vrot.slane %v2911_v23, 2  ;;  %v2947_v46 = vsel %vm268_vm0, %v402_v29, %v403_v30  ;;  %v2950_v24 = vsel %vm325_vm1, %v393_v59, %v395_v31  ;;  %v2008_v59 = vpack.c.bf16 %v527_v27, %v526_v26  ;;  %v231_v26 = vld [vmem:[%s2488_s14 + $0x88] sm:$0x3]  ;;  %v3006_v29 = vld [vmem:[%s2488_s14 + $0x90] sm:$0xff] }
  0x4c   : > { %2001 = vmatpush3.bf16.msra.mxu1 %v2000_v48  ;;  %1971 = vmatprep.subr.bf16.mxu0 %v1970_v49  ;;  %v405_v48 = vrot.slane %v243_v41, 1  ;;  %v292_v49 = vrot.slane %v2887_v4, 1  ;;  %v2970_v6 = vsel %vm325_vm1, %v410_v45, %v412_v57  ;;  %v352_v27 = vrot.slane %v2961_v47, 2  ;;  %v234_v41 = vld [vmem:[%s2488_s14 + $0xa0] sm:$0x3]  ;;  %v3037_v57 = vld [vmem:[%s2488_s14 + $0xa8] sm:$0xff] }
  0x4d   : > { %655 = vmatmul.mubr.f32.gmra.mrb[12].mxu0 %v2709_v53  ;;  %2003 = vmatprep.subr.bf16.mxu1 %v2002_v0  ;;  %v2955_v56 = vsel %vm325_vm1, %v409_v44, %v410_v45  ;;  %v2958_v0 = vld [vmem:[%s2488_s14 + $0x78] sm:$0xff]  ;;  %v297_v28 = vrot.slane %v231_v26, 1  ;;  %v299_v31 = vrot.slane %v3006_v29, 1  ;;  %v354_v38 = vrot.slane %v231_v26, 2 }
  0x4e   : > { %800 = vmatmul.mubr.f32.gmra.mrb[12].mxu1 %v2870_v60  ;;  %659 = vmatprep.mubr.f32.mxu0 %v2873_v61  ;;  %v2966_v5 = vsel %vm268_vm0, %v403_v30, %v405_v48  ;;  %v294_v7 = vrot.slane %v2958_v0, 1  ;;  %v3009_v30 = vld [vmem:[%s2488_s14 + $0x98] sm:$0xff]  ;;  %v356_v44 = vrot.slane %v3006_v29, 2 }
  0x4f   : > { %804 = vmatprep.mubr.f32.mxu1 %v2781_v21  ;;  %1973 = vmatpush3.bf16.msra.mxu0 %v1972_v12  ;;  %v2979_v12 = vsel %vm325_vm1, %v346_v3, %v347_v11  ;;  %v300_v40 = vrot.slane %v3009_v30, 1  ;;  %v3030_v45 = vsel %vm325_vm1, %v352_v27, %v354_v38  ;;  %v364_v38 = vrot.slane %v2809_v35, 2  ;;  %v547_v35 = vld [vmem:[%s3420_s1 + $0x418] sm:$0xff] }
  0x50   : > { %2005 = vmatpush3.bf16.msra.mxu1 %v2004_v13  ;;  %1975 = vmatprep.subr.bf16.mxu0 %v1974_v16  ;;  %v2984_v13 = vsel %vm268_vm0, %v290_v62, %v292_v49  ;;  %v349_v16 = vrot.slane %v2887_v4, 2  ;;  %v351_v62 = vrot.slane %v2958_v0, 2  ;;  %v3002_v4 = vsel %vm268_vm0, %v294_v7, %v295_v20 }
  0x51   : > { %660 = vmatmul.mubr.f32.gmra.mrb[14].mxu0 %v2713_v55  ;;  %2007 = vmatprep.subr.bf16.mxu1 %v2006_v36  ;;  %v3020_v36 = vsel %vm268_vm0, %v295_v20, %v297_v28  ;;  %v3033_v48 = vsel %vm268_vm0, %v299_v31, %v300_v40  ;;  %v357_v49 = vrot.slane %v3009_v30, 2  ;;  %v304_v20 = vrot.slane %v3037_v57, 1 }
  0x52   : > { %805 = vmatmul.mubr.f32.gmra.mrb[14].mxu1 %v2883_v2  ;;  %664 = vmatprep.mubr.f32.mxu0 %v2930_v32  ;;  %v2999_v3 = vsel %vm325_vm1, %v347_v11, %v349_v16  ;;  %v3017_v11 = vsel %vm325_vm1, %v351_v62, %v352_v27  ;;  %v359_v16 = vrot.slane %v234_v41, 2  ;;  %v361_v27 = vrot.slane %v3037_v57, 2 }
  0x53   : > { %809 = vmatprep.mubr.f32.mxu1 %v2958_v0  ;;  %1977 = vmatpush3.bf16.msra.mxu0 %v1976_v54  ;;  %v302_v54 = vrot.slane %v234_v41, 1  ;;  %v3060_v62 = vsel %vm268_vm0, %v304_v20, %v305_v37  ;;  %v362_v28 = vrot.slane %v2777_v17, 2  ;;  %v559_v20 = vld [vmem:[%s3420_s1 + $0x478] sm:$0xff] }
  0x54   : > { %2009 = vmatpush3.bf16.msra.mxu1 %v2008_v59  ;;  %2011 = vmatprep.subr.bf16.mxu0 %v2963_v1  ;;  %v3044_v59 = vsel %vm325_vm1, %v356_v44, %v357_v49  ;;  %v3055_v26 = vsel %vm325_vm1, %v357_v49, %v359_v16  ;;  %v548_v44 = vld [vmem:[%s3420_s1 + $0x420] sm:$0xff]  ;;  %v549_v49 = vld [vmem:[%s3420_s1 + $0x428] sm:$0xff] }
  0x55   : > { %665 = vmatmul.mubr.f32.gmra.mrb[16].mxu0 %v2729_v63  ;;  %2042 = vmatprep.subr.bf16.mxu1 %v2963_v1  ;;  %v3047_v7 = vsel %vm268_vm0, %v300_v40, %v302_v54  ;;  %v3069_v31 = vsel %vm325_vm1, %v361_v27, %v362_v28  ;;  %v3077_v37 = vsel %vm325_vm1, %v362_v28, %v364_v38  ;;  %v546_v40 = vld [vmem:[%s3420_s1 + $0x410] sm:$0xff]  ;;  %v555_v54 = vld [vmem:[%s3420_s1 + $0x458] sm:$0xff]  ;;  %v557_v16 = vld [vmem:[%s3420_s1 + $0x468] sm:$0xff] }
  0x56   : > { %810 = vmatmul.mubr.f32.gmra.mrb[16].mxu1 %v2979_v12  ;;  %669 = vmatprep.mubr.f32.mxu0 %v2984_v13  ;;  %v2014_v41 = vpack.c.bf16 %v547_v35, %v546_v40 }
  0x57   : > { %814 = vmatprep.mubr.f32.mxu1 %v2961_v47 }
  0x59   : > { %670 = vmatmul.mubr.f32.gmra.mrb[18].mxu0 %v2781_v21 }
  0x5a   : > { %815 = vmatmul.mubr.f32.gmra.mrb[18].mxu1 %v2999_v3  ;;  %674 = vmatprep.mubr.f32.mxu0 %v3002_v4 }
  0x5b   : > { %819 = vmatprep.mubr.f32.mxu1 %v3006_v29 }
  0x5d   : > { %675 = vmatmul.mubr.f32.gmra.mrb[20].mxu0 %v2958_v0 }
  0x5e   : > { %820 = vmatmul.mubr.f32.gmra.mrb[20].mxu1 %v3017_v11  ;;  %679 = vmatprep.mubr.f32.mxu0 %v3020_v36 }
  0x5f   : > { %824 = vmatprep.mubr.f32.mxu1 %v3009_v30 }
  0x61   : > { %680 = vmatmul.mubr.f32.gmra.mrb[22].mxu0 %v2961_v47 }
  0x62   : > { %825 = vmatmul.mubr.f32.gmra.mrb[22].mxu1 %v3030_v45  ;;  %684 = vmatprep.mubr.f32.mxu0 %v3033_v48 }
  0x63   : > { %829 = vmatprep.mubr.f32.mxu1 %v3037_v57 }
  0x65   : > { %685 = vmatmul.mubr.f32.gmra.mrb[24].mxu0 %v3006_v29 }
  0x66   : > { %830 = vmatmul.mubr.f32.gmra.mrb[24].mxu1 %v3044_v59  ;;  %689 = vmatprep.mubr.f32.mxu0 %v3047_v7 }
  0x67   : > { %834 = vmatprep.mubr.f32.mxu1 %v2777_v17 }
  0x69   : > { %690 = vmatmul.mubr.f32.gmra.mrb[26].mxu0 %v3009_v30 }
  0x6a   : > { %835 = vmatmul.mubr.f32.gmra.mrb[26].mxu1 %v3055_v26  ;;  %694 = vmatprep.mubr.f32.mxu0 %v3060_v62 }
  0x6b   : > { %839 = vmatprep.mubr.f32.mxu1 %v2806_v34 }
  0x6d   : > { %695 = vmatmul.mubr.f32.gmra.mrb[28].mxu0 %v3037_v57 }
  0x6e   : > { %840 = vmatmul.mubr.f32.gmra.mrb[28].mxu1 %v3069_v31  ;;  %699 = vmatprep.mubr.f32.mxu0 %v2865_v58 }
  0x6f   : > { %844 = vmatprep.mubr.f32.mxu1 %v2819_v39 }
  0x71   : > { %700 = vmatmul.mubr.f32.gmra.mrb[30].mxu0 %v2777_v17 }
  0x72   : > { %845 = vmatmul.mubr.f32.gmra.mrb[30].mxu1 %v3077_v37  ;;  %914 = vmatprep.mubr.f32.mxu0 %v2654_v18  ;;  %v550_v18 = vld [vmem:[%s3420_s1 + $0x430] sm:$0xff] }
  0x73   : > { %1059 = vmatprep.mubr.f32.mxu1 %v2706_v51 }
  0x75   : > { %915 = vmatmul.mubr.f32.vlgmr.msra.gmra.mrb[32].mxu0 %v2623_v14  ;;  %v2018_v14 = vpack.c.bf16 %v549_v49, %v548_v44 }
  0x76   : > { %1060 = vmatmul.mubr.f32.vlgmr.msra.gmra.mrb[32].mxu1 %v2626_v15  ;;  %2013 = vmatpush3.bf16.msra.mxu0 %v2963_v1  ;;  %v551_v15 = vld [vmem:[%s3420_s1 + $0x438] sm:$0xff] }
  0x77   : > { %2050 = vmatpush3.bf16.msra.mxu1 %v2963_v1  ;;  %919 = vmatprep.mubr.f32.mxu0 %v2703_v50  ;;  %v2022_v50 = vpack.c.bf16 %v551_v15, %v550_v18  ;;  %v553_v1 = vld [vmem:[%s3420_s1 + $0x448] sm:$0xff] }
  0x78   : > { %1064 = vmatprep.mubr.f32.mxu1 %v2762_v9  ;;  %2015 = vmatprep.subr.bf16.mxu0 %v2014_v41 }
  0x79   : > { %920 = vmatmul.mubr.f32.gmra.mrb[34].mxu0 %v2665_v33  ;;  %2043 = vmatprep.subr.bf16.mxu1 %v2014_v41  ;;  %v552_v33 = vld [vmem:[%s3420_s1 + $0x440] sm:$0xff] }
  0x7a   : > { %1065 = vmatmul.mubr.f32.gmra.mrb[34].mxu1 %v2630_v19  ;;  %924 = vmatprep.mubr.f32.mxu0 %v2745_v52  ;;  %v2026_v19 = vpack.c.bf16 %v553_v1, %v552_v33 }
  0x7b   : > { %1069 = vmatprep.mubr.f32.mxu1 %v2830_v43  ;;  %2017 = vmatpush3.bf16.msra.mxu0 %v2014_v41 }
  0x7c   : > { %2051 = vmatpush3.bf16.msra.mxu1 %v2014_v41  ;;  %2019 = vmatprep.subr.bf16.mxu0 %v2018_v14 }
  0x7d   : > { %925 = vmatmul.mubr.f32.gmra.mrb[36].mxu0 %v2706_v51  ;;  %2044 = vmatprep.subr.bf16.mxu1 %v2018_v14  ;;  %v554_v51 = vld [vmem:[%s3420_s1 + $0x450] sm:$0xff] }
  0x7e   : > { %1070 = vmatmul.mubr.f32.gmra.mrb[36].mxu1 %v2709_v53  ;;  %929 = vmatprep.mubr.f32.mxu0 %v2827_v42  ;;  %v2030_v53 = vpack.c.bf16 %v555_v54, %v554_v51 }
  0x7f   : > { %1074 = vmatprep.mubr.f32.mxu1 %v2873_v61  ;;  %2021 = vmatpush3.bf16.msra.mxu0 %v2018_v14 }
  0x80   : > { %2052 = vmatpush3.bf16.msra.mxu1 %v2018_v14  ;;  %2023 = vmatprep.subr.bf16.mxu0 %v2022_v50 }
  0x81   : > { %930 = vmatmul.mubr.f32.gmra.mrb[38].mxu0 %v2762_v9  ;;  %2045 = vmatprep.subr.bf16.mxu1 %v2022_v50  ;;  %v556_v9 = vld [vmem:[%s3420_s1 + $0x460] sm:$0xff] }
  0x82   : > { %1075 = vmatmul.mubr.f32.gmra.mrb[38].mxu1 %v2713_v55  ;;  %934 = vmatprep.mubr.f32.mxu0 %v2870_v60  ;;  %v2034_v55 = vpack.c.bf16 %v557_v16, %v556_v9 }
  0x83   : > { %1079 = vmatprep.mubr.f32.mxu1 %v2930_v32  ;;  %2025 = vmatpush3.bf16.msra.mxu0 %v2022_v50 }
  0x84   : > { %2053 = vmatpush3.bf16.msra.mxu1 %v2022_v50  ;;  %2027 = vmatprep.subr.bf16.mxu0 %v2026_v19 }
  0x85   : > { %935 = vmatmul.mubr.f32.gmra.mrb[40].mxu0 %v2830_v43  ;;  %2046 = vmatprep.subr.bf16.mxu1 %v2026_v19  ;;  %v558_v43 = vld [vmem:[%s3420_s1 + $0x470] sm:$0xff] }
  0x86   : > { %1080 = vmatmul.mubr.f32.gmra.mrb[40].mxu1 %v2729_v63  ;;  %939 = vmatprep.mubr.f32.mxu0 %v2883_v2  ;;  %v2038_v63 = vpack.c.bf16 %v559_v20, %v558_v43 }
  0x87   : > { %1084 = vmatprep.mubr.f32.mxu1 %v2984_v13  ;;  %2029 = vmatpush3.bf16.msra.mxu0 %v2026_v19 }
  0x88   : > { %2054 = vmatpush3.bf16.msra.mxu1 %v2026_v19  ;;  %2031 = vmatprep.subr.bf16.mxu0 %v2030_v53 }
  0x89   : > { %940 = vmatmul.mubr.f32.gmra.mrb[42].mxu0 %v2873_v61  ;;  %2047 = vmatprep.subr.bf16.mxu1 %v2030_v53 }
  0x8a   : > { %1085 = vmatmul.mubr.f32.gmra.mrb[42].mxu1 %v2781_v21  ;;  %944 = vmatprep.mubr.f32.mxu0 %v2979_v12 }
  0x8b   : > { %1089 = vmatprep.mubr.f32.mxu1 %v3002_v4  ;;  %2033 = vmatpush3.bf16.msra.mxu0 %v2030_v53 }
  0x8c   : > { %2055 = vmatpush3.bf16.msra.mxu1 %v2030_v53  ;;  %2035 = vmatprep.subr.bf16.mxu0 %v2034_v55 }
  0x8d   : > { %945 = vmatmul.mubr.f32.gmra.mrb[44].mxu0 %v2930_v32  ;;  %2048 = vmatprep.subr.bf16.mxu1 %v2034_v55 }
  0x8e   : > { %1090 = vmatmul.mubr.f32.gmra.mrb[44].mxu1 %v2958_v0  ;;  %949 = vmatprep.mubr.f32.mxu0 %v2999_v3 }
  0x8f   : > { %1094 = vmatprep.mubr.f32.mxu1 %v3020_v36  ;;  %2037 = vmatpush3.bf16.msra.mxu0 %v2034_v55 }
  0x90   : > { %2056 = vmatpush3.bf16.msra.mxu1 %v2034_v55  ;;  %2039 = vmatprep.subr.bf16.mxu0 %v2038_v63 }
  0x91   : > { %950 = vmatmul.mubr.f32.gmra.mrb[46].mxu0 %v2984_v13  ;;  %2049 = vmatprep.subr.bf16.mxu1 %v2038_v63 }
  0x92   : > { %1095 = vmatmul.mubr.f32.gmra.mrb[46].mxu1 %v2961_v47  ;;  %954 = vmatprep.mubr.f32.mxu0 %v3017_v11 }
  0x93   : > { %1099 = vmatprep.mubr.f32.mxu1 %v3033_v48  ;;  %2041 = vmatpush3.bf16.msra.mxu0 %v2038_v63 }
  0x94   : > { %2057 = vmatpush3.bf16.msra.mxu1 %v2038_v63 }
  0x95   : > { %955 = vmatmul.mubr.f32.gmra.mrb[48].mxu0 %v3002_v4 }
  0x96   : > { %1100 = vmatmul.mubr.f32.gmra.mrb[48].mxu1 %v3006_v29  ;;  %959 = vmatprep.mubr.f32.mxu0 %v3030_v45 }
  0x97   : > { %1104 = vmatprep.mubr.f32.mxu1 %v3047_v7 }
  0x99   : > { %960 = vmatmul.mubr.f32.gmra.mrb[50].mxu0 %v3020_v36 }
  0x9a   : > { %1105 = vmatmul.mubr.f32.gmra.mrb[50].mxu1 %v3009_v30  ;;  %964 = vmatprep.mubr.f32.mxu0 %v3044_v59 }
  0x9b   : > { %1109 = vmatprep.mubr.f32.mxu1 %v3060_v62 }
  0x9d   : > { %965 = vmatmul.mubr.f32.gmra.mrb[52].mxu0 %v3033_v48 }
  0x9e   : > { %1110 = vmatmul.mubr.f32.gmra.mrb[52].mxu1 %v3037_v57  ;;  %969 = vmatprep.mubr.f32.mxu0 %v3055_v26 }
  0x9f   : > { %1114 = vmatprep.mubr.f32.mxu1 %v2865_v58 }
  0xa1   : > { %970 = vmatmul.mubr.f32.gmra.mrb[54].mxu0 %v3047_v7 }
  0xa2   : > { %1115 = vmatmul.mubr.f32.gmra.mrb[54].mxu1 %v2777_v17  ;;  %974 = vmatprep.mubr.f32.mxu0 %v3069_v31 }
  0xa3   : > { %1119 = vmatprep.mubr.f32.mxu1 %v2899_v8 }
  0xa5   : > { %975 = vmatmul.mubr.f32.gmra.mrb[56].mxu0 %v3060_v62 }
  0xa6   : > { %1120 = vmatmul.mubr.f32.gmra.mrb[56].mxu1 %v2806_v34  ;;  %979 = vmatprep.mubr.f32.mxu0 %v3077_v37 }
  0xa7   : > { %1124 = vmatprep.mubr.f32.mxu1 %v2944_v22 }
  0xa9   : > { %980 = vmatmul.mubr.f32.gmra.mrb[58].mxu0 %v2865_v58 }
  0xaa   : > { %1125 = vmatmul.mubr.f32.gmra.mrb[58].mxu1 %v2819_v39  ;;  %984 = vmatprep.mubr.f32.mxu0 %v2902_v10 }
  0xab   : > { %1129 = vmatprep.mubr.f32.mxu1 %v2947_v46 }
  0xad   : > { %985 = vmatmul.mubr.f32.gmra.mrb[60].mxu0 %v2899_v8 }
  0xae   : > { %1130 = vmatmul.mubr.f32.gmra.mrb[60].mxu1 %v2911_v23  ;;  %989 = vmatprep.mubr.f32.mxu0 %v2950_v24 }
  0xaf   : > { %1134 = vmatprep.mubr.f32.mxu1 %v2966_v5 }
  0xb1   : > { %990 = vmatmul.mubr.f32.gmra.mrb[62].mxu0 %v2944_v22 }
  0xb2   : > { %1135 = vmatmul.mubr.f32.gmra.mrb[62].mxu1 %v2914_v25  ;;  %1858 = vmatprep.mubr.f32.mxu0 %v2745_v52 }
  0xb3   : > { %1870 = vmatprep.mubr.f32.mxu1 %v3044_v59 }
  0xb5   : > { %1859 = vmatmul.mubr.f32.vlgmr.msra.gmra.mrb[64].mxu0 %v2827_v42 }
  0xb6   : > { %1871 = vmatmul.mubr.f32.vlgmr.msra.gmra.mrb[64].mxu1 %v3055_v26  ;;  %1861 = vmatprep.mubr.f32.mxu0 %v2870_v60 }
  0xb7   : > { %1873 = vmatprep.mubr.f32.mxu1 %v3069_v31 }
  0xb9   : > { %1862 = vmatmul.mubr.f32.gmra.mrb[66].mxu0 %v2883_v2 }
  0xba   : > { %1874 = vmatmul.mubr.f32.gmra.mrb[66].mxu1 %v3077_v37  ;;  %1864 = vmatprep.mubr.f32.mxu0 %v2979_v12 }
  0xbb   : > { %1876 = vmatprep.mubr.f32.mxu1 %v2902_v10 }
  0xbd   : > { %1865 = vmatmul.mubr.f32.gmra.mrb[68].mxu0 %v2999_v3 }
  0xbe   : > { %1877 = vmatmul.mubr.f32.gmra.mrb[68].mxu1 %v2950_v24  ;;  %1867 = vmatprep.mubr.f32.mxu0 %v3017_v11 }
  0xbf   : > { %1879 = vmatprep.mubr.f32.mxu1 %v2955_v56 }
  0xc1   : > { %1868 = vmatmul.mubr.f32.gmra.mrb[70].mxu0 %v3030_v45 }
  0xc2   : > { %1880 = vmatmul.mubr.f32.gmra.mrb[70].mxu1 %v2970_v6 }
 0x108   : > { %v1506_v52 = vpop.f32.mrb[0].mxu0 }
 0x109   : > { %v1586_v17 = vpop.f32.mrb[0].mxu1  ;;  %v1507_v21 = vpop.f32.mrb[1].mxu0 }
 0x10a   : > { %v1508_v34 = vadd.f32 %v1507_v21, %v1506_v52  ;;  %v1587_v39 = vpop.f32.mrb[1].mxu1 }
 0x10b   : > { %v1588_v42 = vadd.f32 %v1587_v39, %v1586_v17 }
 0x10c   : > { %v1509_v58 = vpop.f32.mrb[2].mxu0 }
 0x10d   : > { %v3205_v60 = vadd.f32 %v1588_v42, %v1508_v34  ;;  %v1589_v61 = vpop.f32.mrb[2].mxu1  ;;  %v1510_v2 = vpop.f32.mrb[3].mxu0 }
 0x10e   : > { %v1511_v8 = vadd.f32 %v1510_v2, %v1509_v58  ;;  %v1590_v10 = vpop.f32.mrb[3].mxu1 }
 0x10f   : > { %v1591_v23 = vadd.f32 %v1590_v10, %v1589_v61 }
 0x110   : > { %v1512_v25 = vpop.f32.mrb[4].mxu0 }
 0x111   : > { %v3207_v32 = vadd.f32 %v1591_v23, %v1511_v8  ;;  %v1592_v22 = vpop.f32.mrb[4].mxu1  ;;  %v1513_v46 = vpop.f32.mrb[5].mxu0 }
 0x112   : > { %v1514_v24 = vadd.f32 %v1513_v46, %v1512_v25  ;;  %v1593_v56 = vpop.f32.mrb[5].mxu1 }
 0x113   : > { %v1594_v0 = vadd.f32 %v1593_v56, %v1592_v22 }
 0x114   : > { %v1515_v47 = vpop.f32.mrb[6].mxu0 }
 0x115   : > { %v3209_v5 = vadd.f32 %v1594_v0, %v1514_v24  ;;  %v1595_v6 = vpop.f32.mrb[6].mxu1  ;;  %v1516_v12 = vpop.f32.mrb[7].mxu0 }
 0x116   : > { %v1517_v13 = vadd.f32 %v1516_v12, %v1515_v47  ;;  %v1596_v3 = vpop.f32.mrb[7].mxu1 }
 0x117   : > { %v1597_v4 = vadd.f32 %v1596_v3, %v1595_v6 }
 0x118   : > { %v1518_v29 = vpop.f32.mrb[8].mxu0 }
 0x119   : > { %v3211_v30 = vadd.f32 %v1597_v4, %v1517_v13  ;;  %v1598_v11 = vpop.f32.mrb[8].mxu1  ;;  %v1519_v36 = vpop.f32.mrb[9].mxu0 }
 0x11a   : > { %v1520_v45 = vadd.f32 %v1519_v36, %v1518_v29  ;;  %v1599_v48 = vpop.f32.mrb[9].mxu1 }
 0x11b   : > { %v1600_v57 = vadd.f32 %v1599_v48, %v1598_v11 }
 0x11c   : > { %v1521_v59 = vpop.f32.mrb[10].mxu0 }
 0x11d   : > { %v3213_v7 = vadd.f32 %v1600_v57, %v1520_v45  ;;  %v1601_v26 = vpop.f32.mrb[10].mxu1  ;;  %v1522_v62 = vpop.f32.mrb[11].mxu0 }
 0x11e   : > { %v1523_v27 = vadd.f32 %v1522_v62, %v1521_v59  ;;  %v1602_v28 = vpop.f32.mrb[11].mxu1 }
 0x11f   : > { %v1603_v31 = vadd.f32 %v1602_v28, %v1601_v26 }
 0x120   : > { %v1524_v38 = vpop.f32.mrb[12].mxu0 }
 0x121   : > { %v3215_v37 = vadd.f32 %v1603_v31, %v1523_v27  ;;  %v1604_v40 = vpop.f32.mrb[12].mxu1  ;;  %v1525_v35 = vpop.f32.mrb[13].mxu0 }
 0x122   : > { %v1526_v41 = vadd.f32 %v1525_v35, %v1524_v38  ;;  %v1605_v44 = vpop.f32.mrb[13].mxu1 }
 0x123   : > { %v1606_v49 = vadd.f32 %v1605_v44, %v1604_v40 }
 0x124   : > { %v1527_v14 = vpop.f32.mrb[14].mxu0 }
 0x125   : > { %v3217_v18 = vadd.f32 %v1606_v49, %v1526_v41  ;;  %v1607_v15 = vpop.f32.mrb[14].mxu1  ;;  %v1528_v50 = vpop.f32.mrb[15].mxu0 }
 0x126   : > { %v1529_v33 = vadd.f32 %v1528_v50, %v1527_v14  ;;  %v1608_v1 = vpop.f32.mrb[15].mxu1 }
 0x127   : > { %v1609_v19 = vadd.f32 %v1608_v1, %v1607_v15 }
 0x128   : > { %v1530_v51 = vpop.f32.mrb[16].mxu0 }
 0x129   : > { %v3219_v54 = vadd.f32 %v1609_v19, %v1529_v33  ;;  %v1610_v53 = vpop.f32.mrb[16].mxu1  ;;  %v1531_v9 = vpop.f32.mrb[17].mxu0 }
 0x12a   : > { %v1532_v16 = vadd.f32 %v1531_v9, %v1530_v51  ;;  %v1611_v55 = vpop.f32.mrb[17].mxu1 }
 0x12b   : > { %v1612_v43 = vadd.f32 %v1611_v55, %v1610_v53 }
 0x12c   : > { %v1533_v20 = vpop.f32.mrb[18].mxu0 }
 0x12d   : > { %v3221_v63 = vadd.f32 %v1612_v43, %v1532_v16  ;;  %v1613_v52 = vpop.f32.mrb[18].mxu1  ;;  %v1534_v17 = vpop.f32.mrb[19].mxu0 }
 0x12e   : > { %v1535_v21 = vadd.f32 %v1534_v17, %v1533_v20  ;;  %v1614_v34 = vpop.f32.mrb[19].mxu1 }
 0x12f   : > { %v1615_v39 = vadd.f32 %v1614_v34, %v1613_v52 }
 0x130   : > { %v1536_v42 = vpop.f32.mrb[20].mxu0 }
 0x131   : > { %v3223_v58 = vadd.f32 %v1615_v39, %v1535_v21  ;;  %v1616_v61 = vpop.f32.mrb[20].mxu1  ;;  %v1537_v2 = vpop.f32.mrb[21].mxu0 }
 0x132   : > { %v1538_v8 = vadd.f32 %v1537_v2, %v1536_v42  ;;  %v1617_v10 = vpop.f32.mrb[21].mxu1 }
 0x133   : > { %v1618_v23 = vadd.f32 %v1617_v10, %v1616_v61 }
 0x134   : > { %v1539_v25 = vpop.f32.mrb[22].mxu0 }
 0x135   : > { %v3225_v22 = vadd.f32 %v1618_v23, %v1538_v8  ;;  %v1619_v46 = vpop.f32.mrb[22].mxu1  ;;  %v1540_v24 = vpop.f32.mrb[23].mxu0 }
 0x136   : > { %v1541_v56 = vadd.f32 %v1540_v24, %v1539_v25  ;;  %v1620_v0 = vpop.f32.mrb[23].mxu1 }
 0x137   : > { %v1621_v47 = vadd.f32 %v1620_v0, %v1619_v46 }
 0x138   : > { %v1542_v6 = vpop.f32.mrb[24].mxu0 }
 0x139   : > { %v3227_v12 = vadd.f32 %v1621_v47, %v1541_v56  ;;  %v1622_v13 = vpop.f32.mrb[24].mxu1  ;;  %v1543_v3 = vpop.f32.mrb[25].mxu0 }
 0x13a   : > { %v1544_v4 = vadd.f32 %v1543_v3, %v1542_v6  ;;  %v1623_v29 = vpop.f32.mrb[25].mxu1 }
 0x13b   : > { %v1624_v11 = vadd.f32 %v1623_v29, %v1622_v13 }
 0x13c   : > { %v1545_v36 = vpop.f32.mrb[26].mxu0 }
 0x13d   : > { %v3229_v45 = vadd.f32 %v1624_v11, %v1544_v4  ;;  %v1625_v48 = vpop.f32.mrb[26].mxu1  ;;  %v1546_v57 = vpop.f32.mrb[27].mxu0 }
 0x13e   : > { %v1547_v59 = vadd.f32 %v1546_v57, %v1545_v36  ;;  %v1626_v26 = vpop.f32.mrb[27].mxu1 }
 0x13f   : > { %v1627_v62 = vadd.f32 %v1626_v26, %v1625_v48 }
 0x140   : > { %v1548_v27 = vpop.f32.mrb[28].mxu0 }
 0x141   : > { %v3231_v28 = vadd.f32 %v1627_v62, %v1547_v59  ;;  %v1628_v31 = vpop.f32.mrb[28].mxu1  ;;  %v1549_v38 = vpop.f32.mrb[29].mxu0 }
 0x142   : > { %v1550_v40 = vadd.f32 %v1549_v38, %v1548_v27  ;;  %v1629_v35 = vpop.f32.mrb[29].mxu1 }
 0x143   : > { %v1630_v41 = vadd.f32 %v1629_v35, %v1628_v31 }
 0x144   : > { %v1551_v44 = vpop.f32.mrb[30].mxu0 }
 0x145   : > { %v3233_v49 = vadd.f32 %v1630_v41, %v1550_v40  ;;  %v1631_v14 = vpop.f32.mrb[30].mxu1  ;;  %v1552_v15 = vpop.f32.mrb[31].mxu0 }
 0x146   : > { %v1553_v50 = vadd.f32 %v1552_v15, %v1551_v44  ;;  %v1632_v33 = vpop.f32.mrb[31].mxu1 }
 0x147   : > { %v1633_v1 = vadd.f32 %v1632_v33, %v1631_v14 }
 0x148   : > { %v1666_v19 = vpop.f32.mrb[32].mxu0 }
 0x149   : > { %v3235_v51 = vadd.f32 %v1633_v1, %v1553_v50  ;;  %v1746_v53 = vpop.f32.mrb[32].mxu1  ;;  %v1667_v9 = vpop.f32.mrb[33].mxu0 }
 0x14a   : > { %v1668_v16 = vadd.f32 %v1667_v9, %v1666_v19  ;;  %v1747_v55 = vpop.f32.mrb[33].mxu1 }
 0x14b   : > { %v1748_v43 = vadd.f32 %v1747_v55, %v1746_v53 }
 0x14c   : > { %v917_v20 = vadd.f32 %v1668_v16, %v3205_v60  ;;  %v1669_v52 = vpop.f32.mrb[34].mxu0 }
 0x14d   : > { %v1749_v17 = vpop.f32.mrb[34].mxu1  ;;  %v1670_v21 = vpop.f32.mrb[35].mxu0 }
 0x14e   : > { %v1671_v34 = vadd.f32 %v1670_v21, %v1669_v52  ;;  %v1750_v39 = vpop.f32.mrb[35].mxu1  ;;  %v3238_v42 = vadd.f32 %v1748_v43, %v917_v20 }
 0x14f   : > { %v1751_v61 = vadd.f32 %v1750_v39, %v1749_v17 }
 0x150   : > { %v922_v2 = vadd.f32 %v1671_v34, %v3207_v32  ;;  %v1672_v8 = vpop.f32.mrb[36].mxu0 }
 0x151   : > { %v1752_v10 = vpop.f32.mrb[36].mxu1  ;;  %v1673_v23 = vpop.f32.mrb[37].mxu0 }
 0x152   : > { %v1674_v25 = vadd.f32 %v1673_v23, %v1672_v8  ;;  %v1753_v46 = vpop.f32.mrb[37].mxu1  ;;  %v3241_v24 = vadd.f32 %v1751_v61, %v922_v2 }
 0x153   : > { %v1754_v56 = vadd.f32 %v1753_v46, %v1752_v10 }
 0x154   : > { %v927_v60 = vadd.f32 %v1674_v25, %v3209_v5  ;;  %v1675_v0 = vpop.f32.mrb[38].mxu0 }
 0x155   : > { %v1755_v47 = vpop.f32.mrb[38].mxu1  ;;  %v1676_v6 = vpop.f32.mrb[39].mxu0 }
 0x156   : > { %v1677_v13 = vadd.f32 %v1676_v6, %v1675_v0  ;;  %v1756_v3 = vpop.f32.mrb[39].mxu1  ;;  %v3244_v4 = vadd.f32 %v1754_v56, %v927_v60 }
 0x157   : > { %v1757_v29 = vadd.f32 %v1756_v3, %v1755_v47 }
 0x158   : > { %v932_v32 = vadd.f32 %v1677_v13, %v3211_v30  ;;  %v1678_v11 = vpop.f32.mrb[40].mxu0 }
 0x159   : > { %v1758_v36 = vpop.f32.mrb[40].mxu1  ;;  %v1679_v48 = vpop.f32.mrb[41].mxu0 }
 0x15a   : > { %v1680_v57 = vadd.f32 %v1679_v48, %v1678_v11  ;;  %v1759_v59 = vpop.f32.mrb[41].mxu1  ;;  %v3247_v26 = vadd.f32 %v1757_v29, %v932_v32 }
 0x15b   : > { %v1760_v62 = vadd.f32 %v1759_v59, %v1758_v36 }
 0x15c   : > { %v937_v5 = vadd.f32 %v1680_v57, %v3213_v7  ;;  %v1681_v27 = vpop.f32.mrb[42].mxu0 }
 0x15d   : > { %v1761_v31 = vpop.f32.mrb[42].mxu1  ;;  %v1682_v38 = vpop.f32.mrb[43].mxu0 }
 0x15e   : > { %v1683_v40 = vadd.f32 %v1682_v38, %v1681_v27  ;;  %v1762_v35 = vpop.f32.mrb[43].mxu1  ;;  %v3250_v41 = vadd.f32 %v1760_v62, %v937_v5 }
 0x15f   : > { %v1763_v44 = vadd.f32 %v1762_v35, %v1761_v31 }
 0x160   : > { %v942_v30 = vadd.f32 %v1683_v40, %v3215_v37  ;;  %v1684_v14 = vpop.f32.mrb[44].mxu0 }
 0x161   : > { %v1764_v15 = vpop.f32.mrb[44].mxu1  ;;  %v1685_v50 = vpop.f32.mrb[45].mxu0 }
 0x162   : > { %v1686_v33 = vadd.f32 %v1685_v50, %v1684_v14  ;;  %v1765_v1 = vpop.f32.mrb[45].mxu1  ;;  %v3253_v19 = vadd.f32 %v1763_v44, %v942_v30 }
 0x163   : > { %v1766_v53 = vadd.f32 %v1765_v1, %v1764_v15 }
 0x164   : > { %v947_v7 = vadd.f32 %v1686_v33, %v3217_v18  ;;  %v1687_v9 = vpop.f32.mrb[46].mxu0 }
 0x165   : > { %v1767_v16 = vpop.f32.mrb[46].mxu1  ;;  %v1688_v55 = vpop.f32.mrb[47].mxu0 }
 0x166   : > { %v1689_v43 = vadd.f32 %v1688_v55, %v1687_v9  ;;  %v1768_v20 = vpop.f32.mrb[47].mxu1  ;;  %v3256_v52 = vadd.f32 %v1766_v53, %v947_v7 }
 0x167   : > { %v1769_v17 = vadd.f32 %v1768_v20, %v1767_v16 }
 0x168   : > { %v952_v37 = vadd.f32 %v1689_v43, %v3219_v54  ;;  %v1690_v21 = vpop.f32.mrb[48].mxu0 }
 0x169   : > { %v1770_v34 = vpop.f32.mrb[48].mxu1  ;;  %v1691_v39 = vpop.f32.mrb[49].mxu0 }
 0x16a   : > { %v1692_v61 = vadd.f32 %v1691_v39, %v1690_v21  ;;  %v1771_v2 = vpop.f32.mrb[49].mxu1  ;;  %v3259_v8 = vadd.f32 %v1769_v17, %v952_v37 }
 0x16b   : > { %v1772_v10 = vadd.f32 %v1771_v2, %v1770_v34 }
 0x16c   : > { %v957_v18 = vadd.f32 %v1692_v61, %v3221_v63  ;;  %v1693_v23 = vpop.f32.mrb[50].mxu0 }
 0x16d   : > { %v1773_v25 = vpop.f32.mrb[50].mxu1  ;;  %v1694_v46 = vpop.f32.mrb[51].mxu0 }
 0x16e   : > { %v1695_v56 = vadd.f32 %v1694_v46, %v1693_v23  ;;  %v1774_v60 = vpop.f32.mrb[51].mxu1  ;;  %v3262_v0 = vadd.f32 %v1772_v10, %v957_v18 }
 0x16f   : > { %v1775_v47 = vadd.f32 %v1774_v60, %v1773_v25 }
 0x170   : > { %v962_v54 = vadd.f32 %v1695_v56, %v3223_v58  ;;  %v1696_v6 = vpop.f32.mrb[52].mxu0  ;;  %v3281_v56 = vld [vmem:[%s3421_s2] ss:$0 sm:$0xff] }
 0x171   : > { %v1776_v13 = vpop.f32.mrb[52].mxu1  ;;  %v1697_v3 = vpop.f32.mrb[53].mxu0 }
 0x172   : > { %v1698_v29 = vadd.f32 %v1697_v3, %v1696_v6  ;;  %v1777_v32 = vpop.f32.mrb[53].mxu1  ;;  %v1107_v11 = vadd.f32 %v1775_v47, %v962_v54  ;;  %v3287_v54 = vld [vmem:[%s3422_s3] ss:$0 sm:$0xff] }
 0x173   : > { %v1778_v36 = vadd.f32 %v1777_v32, %v1776_v13 }
 0x174   : > { %v967_v48 = vadd.f32 %v1698_v29, %v3225_v22  ;;  %v1699_v63 = vpop.f32.mrb[54].mxu0 }
 0x175   : > { %v1779_v57 = vpop.f32.mrb[54].mxu1  ;;  %v1700_v59 = vpop.f32.mrb[55].mxu0 }
 0x176   : > { %v1701_v62 = vadd.f32 %v1700_v59, %v1699_v63  ;;  %v1780_v5 = vpop.f32.mrb[55].mxu1  ;;  %v3266_v27 = vadd.f32 %v1778_v36, %v967_v48 }
 0x177   : > { %v1781_v31 = vadd.f32 %v1780_v5, %v1779_v57 }
 0x178   : > { %v972_v38 = vadd.f32 %v1701_v62, %v3227_v12  ;;  %v1702_v58 = vpop.f32.mrb[56].mxu0 }
 0x179   : > { %v1782_v40 = vpop.f32.mrb[56].mxu1  ;;  %v1703_v35 = vpop.f32.mrb[57].mxu0 }
 0x17a   : > { %v1704_v44 = vadd.f32 %v1703_v35, %v1702_v58  ;;  %v1783_v30 = vpop.f32.mrb[57].mxu1  ;;  %v1117_v14 = vadd.f32 %v1781_v31, %v972_v38 }
 0x17b   : > { %v1784_v15 = vadd.f32 %v1783_v30, %v1782_v40 }
 0x17c   : > { %v977_v50 = vadd.f32 %v1704_v44, %v3229_v45  ;;  %v1705_v22 = vpop.f32.mrb[58].mxu0 }
 0x17d   : > { %v1785_v33 = vpop.f32.mrb[58].mxu1  ;;  %v1706_v1 = vpop.f32.mrb[59].mxu0 }
 0x17e   : > { %v1707_v53 = vadd.f32 %v1706_v1, %v1705_v22  ;;  %v1786_v7 = vpop.f32.mrb[59].mxu1  ;;  %v3270_v9 = vadd.f32 %v1784_v15, %v977_v50 }
 0x17f   : > { %v1787_v16 = vadd.f32 %v1786_v7, %v1785_v33 }
 0x180   : > { %v982_v55 = vadd.f32 %v1707_v53, %v3231_v28  ;;  %v1708_v12 = vpop.f32.mrb[60].mxu0 }
 0x181   : > { %v1788_v43 = vpop.f32.mrb[60].mxu1  ;;  %v1709_v20 = vpop.f32.mrb[61].mxu0 }
 0x182   : > { %v1710_v17 = vadd.f32 %v1709_v20, %v1708_v12  ;;  %v1789_v37 = vpop.f32.mrb[61].mxu1  ;;  %v1127_v21 = vadd.f32 %v1787_v16, %v982_v55 }
 0x183   : > { %v1790_v34 = vadd.f32 %v1789_v37, %v1788_v43 }
 0x184   : > { %v987_v45 = vadd.f32 %v1710_v17, %v3233_v49  ;;  %v1711_v39 = vpop.f32.mrb[62].mxu0 }
 0x185   : > { %v1791_v61 = vpop.f32.mrb[62].mxu1  ;;  %v1712_v2 = vpop.f32.mrb[63].mxu0 }
 0x186   : > { %v1713_v10 = vadd.f32 %v1712_v2, %v1711_v39  ;;  %v1792_v18 = vpop.f32.mrb[63].mxu1  ;;  %v3274_v23 = vadd.f32 %v1790_v34, %v987_v45 }
 0x187   : > { %v1793_v25 = vadd.f32 %v1792_v18, %v1791_v61 }
 0x188   : > { %v992_v28 = vadd.f32 %v1713_v10, %v3235_v51  ;;  %v1860_v46 = vpop.f32.mrb[64].mxu0 }
 0x189   : > { %v1212_v49 = vadd.f32 %v1860_v46, %v3241_v24  ;;  %v1872_v60 = vpop.f32.mrb[64].mxu1  ;;  %v1206_v47 = vpop.f32.mrb[65].mxu0 }
 0x18a   : > { %v1252_v6 = vadd.f32 %v1872_v60, %v1107_v11  ;;  %v1207_v13 = vadd.f32 %v1206_v47, %v3238_v42  ;;  %v1246_v51 = vpop.f32.mrb[65].mxu1  ;;  %v3290_v3 = vadd.f32 %v1793_v25, %v992_v28 }
 0x18b   : > { %v1293_v29 = vmul.f32 %v3281_v56, %v1212_v49  ;;  %v1247_v32 = vadd.f32 %v1246_v51, %v3262_v0 }
 0x18c   : > { %v1301_v24 = vmul.f32 %v3281_v56, %v1252_v6  ;;  %v1292_v36 = vmul.f32 %v3281_v56, %v1207_v13  ;;  %v1863_v48 = vpop.f32.mrb[66].mxu0 }
 0x18d   : > { %v1316_v63 = vadd.f32 %v3287_v54, %v1293_v29  ;;  %v1300_v11 = vmul.f32 %v3281_v56, %v1247_v32  ;;  %v1222_v42 = vadd.f32 %v1863_v48, %v3247_v26  ;;  %v1875_v57 = vpop.f32.mrb[66].mxu1  ;;  %v1216_v59 = vpop.f32.mrb[67].mxu0 }
 0x18e   : > { %v1324_v62 = vadd.f32 %v3287_v54, %v1301_v24  ;;  %v1315_v5 = vadd.f32 %v3287_v54, %v1292_v36  ;;  %v1262_v31 = vadd.f32 %v1875_v57, %v1117_v14  ;;  %v1217_v0 = vadd.f32 %v1216_v59, %v3244_v4  ;;  %v1256_v38 = vpop.f32.mrb[67].mxu1 }
 0x18f   : > { %v1332_v58 = vmax.f32 %v1316_v63, 0.0  ;;  %v1323_v40 = vadd.f32 %v3287_v54, %v1300_v11  ;;  %v1295_v35 = vmul.f32 %v3281_v56, %v1222_v42  ;;  %v1257_v44 = vadd.f32 %v1256_v38, %v3266_v27 }
 0x190   : > { %v1340_v30 = vmax.f32 %v1324_v62, 0.0  ;;  %v1331_v15 = vmax.f32 %v1315_v5, 0.0  ;;  %v1303_v26 = vmul.f32 %v3281_v56, %v1262_v31  ;;  %v1294_v50 = vmul.f32 %v3281_v56, %v1217_v0  ;;  %v1866_v22 = vpop.f32.mrb[68].mxu0 }
 0x191   : > { %1348 = vst [vmem:[%s3309_s13 + $0x8] sm:$0xff] %v1332_v58  ;;  %v1339_v4 = vmax.f32 %v1323_v40, 0.0  ;;  %v1318_v14 = vadd.f32 %v3287_v54, %v1295_v35  ;;  %v1302_v33 = vmul.f32 %v3281_v56, %v1257_v44  ;;  %v1232_v27 = vadd.f32 %v1866_v22, %v3253_v19  ;;  %v1878_v1 = vpop.f32.mrb[68].mxu1  ;;  %v1226_v53 = vpop.f32.mrb[69].mxu0 }
 0x192   : > { %1356 = vst [vmem:[%s3309_s13 + $0x48] sm:$0xff] %v1340_v30  ;;  %1347 = vst [vmem:[%s3309_s13] sm:$0xff] %v1331_v15  ;;  %v1326_v7 = vadd.f32 %v3287_v54, %v1303_v26  ;;  %v1317_v16 = vadd.f32 %v3287_v54, %v1294_v50  ;;  %v1272_v55 = vadd.f32 %v1878_v1, %v1127_v21  ;;  %v1266_v43 = vpop.f32.mrb[69].mxu1 }
 0x193   : > { %v1227_v12 = vadd.f32 %v1226_v53, %v3250_v41  ;;  %1355 = vst [vmem:[%s3309_s13 + $0x40] sm:$0xff] %v1339_v4  ;;  %v1334_v20 = vmax.f32 %v1318_v14, 0.0  ;;  %v1325_v17 = vadd.f32 %v3287_v54, %v1302_v33  ;;  %v1297_v19 = vmul.f32 %v3281_v56, %v1232_v27 }
 0x194   : > { %v1267_v37 = vadd.f32 %v1266_v43, %v3270_v9  ;;  %v1342_v34 = vmax.f32 %v1326_v7, 0.0  ;;  %v1333_v45 = vmax.f32 %v1317_v16, 0.0  ;;  %v1305_v39 = vmul.f32 %v3281_v56, %v1272_v55  ;;  %v1869_v41 = vpop.f32.mrb[70].mxu0 }
 0x195   : > { %v1296_v21 = vmul.f32 %v3281_v56, %v1227_v12  ;;  %1350 = vst [vmem:[%s3309_s13 + $0x18] sm:$0xff] %v1334_v20  ;;  %v1341_v61 = vmax.f32 %v1325_v17, 0.0  ;;  %v1320_v2 = vadd.f32 %v3287_v54, %v1297_v19  ;;  %v1242_v18 = vadd.f32 %v1869_v41, %v3259_v8  ;;  %v1881_v9 = vpop.f32.mrb[70].mxu1  ;;  %v1236_v25 = vpop.f32.mrb[71].mxu0 }
 0x196   : > { %v1304_v10 = vmul.f32 %v3281_v56, %v1267_v37  ;;  %1358 = vst [vmem:[%s3309_s13 + $0x58] sm:$0xff] %v1342_v34  ;;  %1349 = vst [vmem:[%s3309_s13 + $0x10] sm:$0xff] %v1333_v45  ;;  %v1328_v28 = vadd.f32 %v3287_v54, %v1305_v39  ;;  %v1282_v49 = vadd.f32 %v1881_v9, %v3290_v3  ;;  %v1276_v47 = vpop.f32.mrb[71].mxu1 }
 0x197   : > { %v1319_v46 = vadd.f32 %v3287_v54, %v1296_v21  ;;  %v1237_v60 = vadd.f32 %v1236_v25, %v3256_v52  ;;  %1357 = vst [vmem:[%s3309_s13 + $0x50] sm:$0xff] %v1341_v61  ;;  %v1336_v8 = vmax.f32 %v1320_v2, 0.0  ;;  %v1299_v13 = vmul.f32 %v3281_v56, %v1242_v18 }
 0x198   : > { %v1327_v6 = vadd.f32 %v3287_v54, %v1304_v10  ;;  %v1277_v51 = vadd.f32 %v1276_v47, %v3274_v23  ;;  %v1344_v29 = vmax.f32 %v1328_v28, 0.0  ;;  %v1307_v3 = vmul.f32 %v3281_v56, %v1282_v49 }
 0x199   : > { %v1335_v32 = vmax.f32 %v1319_v46, 0.0  ;;  %v1298_v52 = vmul.f32 %v3281_v56, %v1237_v60  ;;  %1352 = vst [vmem:[%s3309_s13 + $0x28] sm:$0xff] %v1336_v8  ;;  %v1322_v36 = vadd.f32 %v3287_v54, %v1299_v13 }
 0x19a   : > { %v1343_v24 = vmax.f32 %v1327_v6, 0.0  ;;  %v1306_v48 = vmul.f32 %v3281_v56, %v1277_v51  ;;  %1360 = vst [vmem:[%s3309_s13 + $0x68] sm:$0xff] %v1344_v29  ;;  %v1330_v23 = vadd.f32 %v3287_v54, %v1307_v3 }
 0x19b   : > { %1351 = vst [vmem:[%s3309_s13 + $0x20] sm:$0xff] %v1335_v32  ;;  %v1321_v63 = vadd.f32 %v3287_v54, %v1298_v52  ;;  %v1338_v11 = vmax.f32 %v1322_v36, 0.0 }
 0x19c   : > { %1359 = vst [vmem:[%s3309_s13 + $0x60] sm:$0xff] %v1343_v24  ;;  %v1329_v42 = vadd.f32 %v3287_v54, %v1306_v48  ;;  %v1346_v57 = vmax.f32 %v1330_v23, 0.0 }
 0x19d   : > { %v1337_v59 = vmax.f32 %v1321_v63, 0.0  ;;  %1354 = vst [vmem:[%s3309_s13 + $0x38] sm:$0xff] %v1338_v11 }
 0x19e   : > { %v1345_v56 = vmax.f32 %v1329_v42, 0.0  ;;  %1362 = vst [vmem:[%s3309_s13 + $0x78] sm:$0xff] %v1346_v57 }
 0x19f   : > { %1353 = vst [vmem:[%s3309_s13 + $0x30] sm:$0xff] %v1337_v59 }
 0x1a0   : > { %1361 = vst [vmem:[%s3309_s13 + $0x70] sm:$0xff] %v1345_v56 }
 0x1a1   : > { %2145 = shalt.err (!%p2142_p6)
}
 0x1a2   : > { %s2146_s9 = scalar_lea.hbm %s3357_s30, 2048  ;;  %s2150_s24 = scalar_lea.hbm %s3423_s4, 8192 }
 0x1a3   : > { %p2147_p7 = scmp.ne.s32.totalorder %s3357_s30, %s2146_s9  ;;  %p2151_p11 = scmp.lt.u32.totalorder %s3357_s30, %s3423_s4 }
 0x1a4   : > { %p2152_p12 = scmp.lt.u32.totalorder %s2150_s24, %s2146_s9  ;;  %p2154_p0 = scmp.lt.u32.totalorder %s2146_s9, %s3357_s30 }
 0x1a5   : > { %p2148_p9 = pnand %p2147_p7, %p2307_p3 }
 0x1a6   : > { %p2153_p13 = por %p2152_p12, %p2151_p11 }
 0x1a7   : > { %p2149_p10 = pneg %p2148_p9 }
 0x1a8   : > { %p2155_p1 = por %p2154_p0, %p2153_p13 }
 0x1aa   : > { %p2156_p2 = pnand %p2155_p1, %p2149_p10 }
 0x1ac   : > { %2159 = shalt.err (!%p2156_p2)
}
 0x1ad   : > { %s2229_s8 = smov 128   ;;  %s2230_s14 = smov 8  }
 0x1ae   : > { %2059 = dma.vmem_to_hbm [thread:$0]  (%p2307_p3), %s3359_s6, 2048, %s3357_s30, %s3367_s10, %s2229_s8, %s2229_s8, %s2230_s14  }
 0x1af PF: > { %p2065_p4 = scmp.ge.s32.totalorder %s2226_s22, 2  ;;  %s1394_s11 = sand.u32 1, %s2198_s15  }
 0x1b0   : > { %s1395_s5 = scalar_lea.sflag [#allocation3], %s1394_s11 }
 0x1b1   : > { %p2062_p5 = pnand %p2065_p4, %p2316_p8 }
 0x1b3   : > { %2193 = dma.done.wait (!%p2062_p5), %s1395_s5, 2048  }
 0x1b4   : > { %2195 = vsyncadd (!%p2062_p5), %s1395_s5, 4294965248  ;;  %s17_s22 = sadd.s32 1, %s2226_s22   ;;  %s3426_s15 = smov %s2202_s16 }
 0x1b5   : > { %p14_p6 = scmp.ge.s32.totalorder %s17_s22, 6   ;;  %s3427_s16 = smov %s2206_s17 }
 0x1b6   : > { %s3428_s17 = smov %s2325_s7  ;;  %s3429_s18 = smov %s2218_s20 }
 0x1b7   : > { %s3430_s19 = smov %s2222_s21  ;;  %s3431_s20 = smov %s3434_s25 }
 0x1b8   : > { %s3432_s21 = smov %s3438_s26  ;;  %16 = sbr.rel (!%p14_p6) target bundleno = 5 (0x5), region = 72 }
 0x1bf   :  { %1400 = vsyncpa [#allocation3], 1 }
 0x1c0   :  { %1402 = vsyncpa [#allocation3 + $0x1], 1 }

</bundles_post_ra>
